<compile_context>
chip_gen: v7x
topology: tpu7x:2x2x1
jax: 0.10.0
libtpu: 0.0.40
codegen_flags: <defaults>
</compile_context>

<pallas_src>
import functools
import numpy as np

import jax
import jax.numpy as jnp
from jax.experimental import pallas as pl
from jax.experimental.pallas import tpu as pltpu

LN_EPS = 1e-5
_SQRT1_2 = 0.7071067811865476
_VMEM_LIMIT = 48 * 1024 * 1024


# ----------------------------- Pallas kernels -------------------------------

def _win_attn_kernel(x_ref, g1_ref, b1_ref, wqkv_ref, bqkv_ref,
                     wproj_ref, bproj_ref, bias_ref, *rest,
                     num_heads, scale, wt, has_mask, has_pad):
    """Fused norm1 + window attention for a tile of `wt` windows.

    All matmuls are batched over the window tile so each grid step issues
    (wt*N)-row MXU ops.  The head axis stays a small static unroll (with the
    matmuls batched over windows) to avoid in-kernel lane-dim transposes.
    """
    if has_pad:
        valid_ref, o_ref = rest
    else:
        (o_ref,) = rest

    x = x_ref[...].astype(jnp.float32)                    # (wt, N, C)
    N, C = x.shape[1], x.shape[2]
    hd = C // num_heads

    # ---- fused norm1 (per token) ----
    mean = jnp.mean(x, axis=-1, keepdims=True)
    var = jnp.mean((x - mean) ** 2, axis=-1, keepdims=True)
    xn = (x - mean) * jax.lax.rsqrt(var + LN_EPS)
    xn = xn * g1_ref[...] + b1_ref[...]
    if has_pad:
        # reference pads AFTER norm1 with zeros -> force padded tokens to 0
        xn = xn * valid_ref[...].astype(jnp.float32)

    # ---- qkv projection: one (wt*N, C) x (C, 3C) matmul ----
    xf = xn.reshape(wt * N, C)
    qkv = jnp.dot(xf, wqkv_ref[...], preferred_element_type=jnp.float32)
    qkv = qkv + bqkv_ref[...]                             # (wt*N, 3C)

    bias = bias_ref[...].astype(jnp.float32)              # (wt,nh,N,N)|(nh,N,N)

    # TODO(synk): on v6e/v7x cast MXU operands to bf16 (keep LN/softmax/bias
    #             math in f32) for higher MXU throughput; kept f32 here to
    #             match the f32 reference semantics.
    acc = None
    for h in range(num_heads):                            # nh small, static
        q = qkv[:, h * hd:(h + 1) * hd].reshape(wt, N, hd) * scale
        k = qkv[:, C + h * hd:C + (h + 1) * hd].reshape(wt, N, hd)
        v = qkv[:, 2 * C + h * hd:2 * C + (h + 1) * hd].reshape(wt, N, hd)

        # scores batched over the window tile: (wt, N, N)
        s = jax.lax.dot_general(q, k, (((2,), (2,)), ((0,), (0,))),
                                preferred_element_type=jnp.float32)
        s = s + (bias[:, h] if has_mask else bias[h])
        s = s - jnp.max(s, axis=-1, keepdims=True)
        p = jnp.exp(s)
        p = p * pl.reciprocal(jnp.sum(p, axis=-1, keepdims=True), approx=True)

        ho = jax.lax.dot_general(p, v, (((2,), (1,)), ((0,), (0,))),
                                 preferred_element_type=jnp.float32)  # (wt,N,hd)
        # output projection decomposed over its contraction dim (head concat)
        part = jnp.dot(ho.reshape(wt * N, hd),
                       wproj_ref[h * hd:(h + 1) * hd, :],
                       preferred_element_type=jnp.float32)            # (wt*N,C)
        acc = part if acc is None else acc + part

    out = acc + bproj_ref[...]
    o_ref[...] = out.reshape(wt, N, C).astype(o_ref.dtype)


def window_attention(xw, bias, valid, g1, b1, wqkv, bqkv, wproj, bproj,
                     num_heads, wt, has_mask):
    """xw: (Bw, N, C) windows.  bias: folded (nW,nh,N,N) if has_mask else (nh,N,N)."""
    Bw, N, C = xw.shape
    scale = float((C // num_heads) ** -0.5)
    has_pad = valid is not None

    kernel = functools.partial(_win_attn_kernel, num_heads=num_heads,
                               scale=scale, wt=wt, has_mask=has_mask,
                               has_pad=has_pad)

    in_specs = [
        pl.BlockSpec((wt, N, C), lambda i: (i, 0, 0)),
        pl.BlockSpec((1, C), lambda i: (0, 0)),
        pl.BlockSpec((1, C), lambda i: (0, 0)),
        pl.BlockSpec((C, 3 * C), lambda i: (0, 0)),
        pl.BlockSpec((1, 3 * C), lambda i: (0, 0)),
        pl.BlockSpec((C, C), lambda i: (0, 0)),
        pl.BlockSpec((1, C), lambda i: (0, 0)),
    ]
    args = [xw, g1.reshape(1, C), b1.reshape(1, C), wqkv,
            bqkv.reshape(1, 3 * C), wproj, bproj.reshape(1, C)]

    if has_mask:
        nW = bias.shape[0]
        nWb = nW // wt                      # wt always divides nW (by choice)
        in_specs.append(pl.BlockSpec((wt, num_heads, N, N),
                                     lambda i: (i % nWb, 0, 0, 0)))
    else:
        in_specs.append(pl.BlockSpec((num_heads, N, N), lambda i: (0, 0, 0)))
    args.append(bias)

    if has_pad:
        in_specs.append(pl.BlockSpec((wt, N, 1), lambda i: (i, 0, 0)))
        args.append(valid)

    return pl.pallas_call(
        kernel,
        out_shape=jax.ShapeDtypeStruct((Bw, N, C), xw.dtype),
        grid=(Bw // wt,),
        in_specs=in_specs,
        out_specs=pl.BlockSpec((wt, N, C), lambda i: (i, 0, 0)),
        compiler_params=pltpu.CompilerParams(
            dimension_semantics=("parallel",),          # windows independent
            vmem_limit_bytes=_VMEM_LIMIT),
    )(*args)


def _add_norm_mlp_kernel(s_ref, a_ref, g_ref, b_ref,
                         w1_ref, b1_ref, w2_ref, b2_ref, o_ref):
    # x = shortcut + attn_out ; out = x + fc2(gelu(fc1(LN(x))))
    x = s_ref[...].astype(jnp.float32) + a_ref[...].astype(jnp.float32)
    mean = jnp.mean(x, axis=-1, keepdims=True)
    var = jnp.mean((x - mean) ** 2, axis=-1, keepdims=True)
    y = (x - mean) * jax.lax.rsqrt(var + LN_EPS) * g_ref[...] + b_ref[...]
    h = jnp.dot(y, w1_ref[...], preferred_element_type=jnp.float32) + b1_ref[...]
    # TODO(synk): tanh-approx GELU would move work to the EUP slot; kept exact
    #             erf to match the reference exactly.
    h = 0.5 * h * (1.0 + jax.lax.erf(h * _SQRT1_2))
    out = x + jnp.dot(h, w2_ref[...], preferred_element_type=jnp.float32) + b2_ref[...]
    o_ref[...] = out.astype(o_ref.dtype)


def add_norm_mlp(shortcut2d, attn2d, gamma, beta, w1, b1, w2, b2,
                 block_rows=512):
    R, C = shortcut2d.shape
    Hd = w1.shape[1]
    RT = R if R <= block_rows else block_rows            # 512-row tiles
    grid = (pl.cdiv(R, RT),)
    return pl.pallas_call(
        _add_norm_mlp_kernel,
        out_shape=jax.ShapeDtypeStruct((R, C), shortcut2d.dtype),
        grid=grid,
        in_specs=[
            pl.BlockSpec((RT, C), lambda i: (i, 0)),
            pl.BlockSpec((RT, C), lambda i: (i, 0)),
            pl.BlockSpec((1, C), lambda i: (0, 0)),
            pl.BlockSpec((1, C), lambda i: (0, 0)),
            pl.BlockSpec((C, Hd), lambda i: (0, 0)),
            pl.BlockSpec((1, Hd), lambda i: (0, 0)),
            pl.BlockSpec((Hd, C), lambda i: (0, 0)),
            pl.BlockSpec((1, C), lambda i: (0, 0)),
        ],
        out_specs=pl.BlockSpec((RT, C), lambda i: (i, 0)),
        compiler_params=pltpu.CompilerParams(
            dimension_semantics=("parallel",),
            vmem_limit_bytes=_VMEM_LIMIT),
    )(shortcut2d, attn2d, gamma.reshape(1, C), beta.reshape(1, C),
      w1, b1.reshape(1, Hd), w2, b2.reshape(1, C))


# ------------------------------- glue (JAX) ---------------------------------

def build_rel_pos_index(ws):
    coords = np.stack(np.meshgrid(np.arange(ws), np.arange(ws), indexing="ij"))
    coords_flatten = coords.reshape(2, -1)
    rel = coords_flatten[:, :, None] - coords_flatten[:, None, :]
    rel = rel.transpose(1, 2, 0).copy()
    rel[:, :, 0] += ws - 1
    rel[:, :, 1] += ws - 1
    rel[:, :, 0] *= 2 * ws - 1
    return rel.sum(-1)                                     # (N, N) int


def build_attn_mask(Hp, Wp, window_size, shift_size):
    img_mask = np.zeros((1, Hp, Wp, 1), np.float32)
    cnt = 0
    for h in (slice(0, -window_size), slice(-window_size, -shift_size),
              slice(-shift_size, None)):
        for w in (slice(0, -window_size), slice(-window_size, -shift_size),
                  slice(-shift_size, None)):
            img_mask[:, h, w, :] = cnt
            cnt += 1
    mw = img_mask.reshape(1, Hp // window_size, window_size,
                          Wp // window_size, window_size, 1)
    mw = mw.transpose(0, 1, 3, 2, 4, 5).reshape(-1, window_size * window_size)
    attn_mask = mw[:, None, :] - mw[:, :, None]
    attn_mask = np.where(attn_mask != 0, -100.0, 0.0).astype(np.float32)
    return jnp.asarray(attn_mask)


def _window_partition(x, ws):
    B, H, W, C = x.shape
    x = x.reshape(B, H // ws, ws, W // ws, ws, C)
    return x.transpose(0, 1, 3, 2, 4, 5).reshape(-1, ws * ws, C)


def _window_reverse(win, ws, B, H, W, C):
    x = win.reshape(B, H // ws, W // ws, ws, ws, C)
    return x.transpose(0, 1, 3, 2, 4, 5).reshape(B, H, W, C)


def _pick_window_tile(nW, N, target_rows=512):
    """Largest divisor of nW whose tile has <= target_rows token rows."""
    wt = 1
    for d in range(1, nW + 1):
        if nW % d == 0 and d * N <= max(target_rows, N):
            wt = d
    return wt


def swin_block_forward(x, mask_matrix, params, *, H, W, window_size,
                       shift_size, num_heads):
    B, L, C = x.shape
    assert L == H * W
    shortcut = x

    ws = window_size
    pad_r = (ws - W % ws) % ws
    pad_b = (ws - H % ws) % ws
    Hp, Wp = H + pad_b, W + pad_r
    nW = (Hp // ws) * (Wp // ws)
    N = ws * ws
    has_pad = (pad_r > 0) or (pad_b > 0)
    has_mask = shift_size > 0

    # ---- pad + cyclic shift + window partition on the RAW input (norm1 is
    #      fused into the attention kernel; LN commutes with roll/partition).
    xi = x.reshape(B, H, W, C)
    xi = jnp.pad(xi, ((0, 0), (0, pad_b), (0, pad_r), (0, 0)))
    if has_mask:
        xi = jnp.roll(xi, (-shift_size, -shift_size), axis=(1, 2))
    xw = _window_partition(xi, ws)                         # (B*nW, N, C)

    valid = None
    if has_pad:
        v = jnp.ones((B, H, W, 1), jnp.float32)
        v = jnp.pad(v, ((0, 0), (0, pad_b), (0, pad_r), (0, 0)))
        if has_mask:
            v = jnp.roll(v, (-shift_size, -shift_size), axis=(1, 2))
        valid = _window_partition(v, ws)                   # (B*nW, N, 1)

    # ---- relative position bias (+ shift mask folded in) ----
    rel_idx = build_rel_pos_index(ws).reshape(-1)
    rel_bias = params["rpb_table"][rel_idx].reshape(N, N, num_heads)
    rel_bias = jnp.transpose(rel_bias, (2, 0, 1)).astype(jnp.float32)  # (nh,N,N)
    if has_mask:
        bias = rel_bias[None, :, :, :] + \
            mask_matrix[:, None, :, :].astype(jnp.float32)             # (nW,nh,N,N)
    else:
        bias = rel_bias

    wt = _pick_window_tile(nW, N)

    # ---- fused norm1 + window attention (Pallas) ----
    attn_windows = window_attention(
        xw, bias, valid, params["g1"], params["b1"],
        params["wqkv"], params["bqkv"], params["wproj"], params["bproj"],
        num_heads, wt, has_mask)

    # ---- window reverse + un-shift + un-pad (glue) ----
    shifted = _window_reverse(attn_windows, ws, B, Hp, Wp, C)
    if has_mask:
        shifted = jnp.roll(shifted, (shift_size, shift_size), axis=(1, 2))
    attn_out = shifted[:, :H, :W, :].reshape(B, L, C)

    # ---- residual + norm2 + MLP + residual (Pallas, row-tiled) ----
    out = add_norm_mlp(shortcut.reshape(B * L, C), attn_out.reshape(B * L, C),
                       params["g2"], params["b2"],
                       params["w1"], params["b1m"],
                       params["w2"], params["b2m"])
    return out.reshape(B, L, C)


# --------------------------- pure-JAX reference -----------------------------

def reference_forward(x, mask_matrix, params, *, H, W, window_size,
                      shift_size, num_heads):
    B, L, C = x.shape
    shortcut = x

    def ln(v, g, b):
        m = jnp.mean(v, axis=-1, keepdims=True)
        va = jnp.mean((v - m) ** 2, axis=-1, keepdims=True)
        return (v - m) * jax.lax.rsqrt(va + LN_EPS) * g + b

    xn = ln(x, params["g1"], params["b1"]).reshape(B, H, W, C)
    pad_r = (window_size - W % window_size) % window_size
    pad_b = (window_size - H % window_size) % window_size
    xn = jnp.pad(xn, ((0, 0), (0, pad_b), (0, pad_r), (0, 0)))
    Hp, Wp = H + pad_b, W + pad_r
    nW = (Hp // window_size) * (Wp // window_size)
    N = window_size * window_size
    if shift_size > 0:
        shifted = jnp.roll(xn, (-shift_size, -shift_size), axis=(1, 2))
        mask = mask_matrix
    else:
        shifted = xn
        mask = jnp.zeros((nW, N, N), x.dtype)
    xw = _window_partition(shifted, window_size)
    Bw = xw.shape[0]
    hd = C // num_heads

    qkv = xw @ params["wqkv"] + params["bqkv"]
    qkv = qkv.reshape(Bw, N, 3, num_heads, hd).transpose(2, 0, 3, 1, 4)
    q, k, v = qkv[0] * hd ** -0.5, qkv[1], qkv[2]
    attn = jnp.einsum("bhnd,bhmd->bhnm", q, k)
    rel_idx = build_rel_pos_index(window_size).reshape(-1)
    rel_bias = params["rpb_table"][rel_idx].reshape(N, N, num_heads)
    attn = attn + jnp.transpose(rel_bias, (2, 0, 1))[None]
    attn = attn.reshape(Bw // nW, nW, num_heads, N, N) + mask[None, :, None]
    attn = jax.nn.softmax(attn.reshape(Bw, num_heads, N, N), axis=-1)
    out = jnp.einsum("bhnm,bhmd->bhnd", attn, v)
    out = out.transpose(0, 2, 1, 3).reshape(Bw, N, C)
    out = out @ params["wproj"] + params["bproj"]

    shifted = _window_reverse(out, window_size, B, Hp, Wp, C)
    if shift_size > 0:
        shifted = jnp.roll(shifted, (shift_size, shift_size), axis=(1, 2))
    attn_out = shifted[:, :H, :W, :].reshape(B, L, C)

    xr = shortcut + attn_out
    y = ln(xr, params["g2"], params["b2"])
    h = jax.nn.gelu(y @ params["w1"] + params["b1m"], approximate=False)
    return xr + (h @ params["w2"] + params["b2m"])


# ---------------------------------- main -------------------------------------

if __name__ == "__main__":
    dim, num_heads = 32, 4
    mlp_ratio = 4.0
    mlp_hidden = int(dim * mlp_ratio)
    window_size = 4

    key = jax.random.PRNGKey(0)
    ks = jax.random.split(key, 12)
    f32 = jnp.float32
    params = {
        "g1": jnp.ones((dim,), f32), "b1": jnp.zeros((dim,), f32),
        "g2": jnp.ones((dim,), f32), "b2": jnp.zeros((dim,), f32),
        "wqkv": 0.05 * jax.random.normal(ks[0], (dim, 3 * dim), f32),
        "bqkv": 0.05 * jax.random.normal(ks[1], (3 * dim,), f32),
        "wproj": 0.05 * jax.random.normal(ks[2], (dim, dim), f32),
        "bproj": 0.05 * jax.random.normal(ks[3], (dim,), f32),
        "rpb_table": 0.02 * jax.random.normal(
            ks[4], ((2 * window_size - 1) ** 2, num_heads), f32),
        "w1": 0.05 * jax.random.normal(ks[5], (dim, mlp_hidden), f32),
        "b1m": 0.05 * jax.random.normal(ks[6], (mlp_hidden,), f32),
        "w2": 0.05 * jax.random.normal(ks[7], (mlp_hidden, dim), f32),
        "b2m": 0.05 * jax.random.normal(ks[8], (dim,), f32),
    }

    # (B, H, W, shift_size): exercise shifted / plain / padded / padded+shifted
    configs = [
        (2, 8, 8, 2),
        (2, 8, 8, 0),
        (2, 7, 7, 0),
        (2, 7, 7, 2),
    ]

    for (B, H, W, shift_size) in configs:
        x = jax.random.normal(ks[9], (B, H * W, dim), f32)

        pad_r = (window_size - W % window_size) % window_size
        pad_b = (window_size - H % window_size) % window_size
        Hp, Wp = H + pad_b, W + pad_r
        mask_matrix = (build_attn_mask(Hp, Wp, window_size, shift_size)
                       if shift_size > 0 else None)

        out = swin_block_forward(x, mask_matrix, params, H=H, W=W,
                                 window_size=window_size,
                                 shift_size=shift_size, num_heads=num_heads)
        out = jax.block_until_ready(out)

        ref = reference_forward(x, mask_matrix, params, H=H, W=W,
                                window_size=window_size,
                                shift_size=shift_size, num_heads=num_heads)
        ref = jax.block_until_ready(ref)

        assert out.shape == (B, H * W, dim)
        # tolerance loosened slightly for the EUP approx-reciprocal softmax
        np.testing.assert_allclose(np.asarray(out), np.asarray(ref),
                                   rtol=5e-3, atol=5e-3)

    print("KERNEL_OK")
</pallas_src>

<mosaic_0001>
module attributes {stable_mosaic.version = 11 : i64} {
  func.func @_win_attn_kernel(%arg0: i32, %arg1: memref<4x16x32xf32, #tpu.memory_space<vmem>>, %arg2: memref<1x32xf32, #tpu.memory_space<vmem>>, %arg3: memref<1x32xf32, #tpu.memory_space<vmem>>, %arg4: memref<32x96xf32, #tpu.memory_space<vmem>>, %arg5: memref<1x96xf32, #tpu.memory_space<vmem>>, %arg6: memref<32x32xf32, #tpu.memory_space<vmem>>, %arg7: memref<1x32xf32, #tpu.memory_space<vmem>>, %arg8: memref<4x4x16x16xf32, #tpu.memory_space<vmem>>, %arg9: memref<4x16x32xf32, #tpu.memory_space<vmem>>) attributes {dimension_semantics = [#tpu.dimension_semantics<parallel>], iteration_bounds = array<i64: 2>, scalar_prefetch = 0 : i64, scratch_operands = 0 : i64, tpu.core_type = #tpu.core_type<tc>, window_params = [{transform_indices = @transform_0, window_bounds = array<i64: 4, 16, 32>}, {pipeline_mode = #tpu.pipeline_mode<synchronous>, transform_indices = @transform_1, window_bounds = array<i64: 1, 32>}, {pipeline_mode = #tpu.pipeline_mode<synchronous>, transform_indices = @transform_2, window_bounds = array<i64: 1, 32>}, {pipeline_mode = #tpu.pipeline_mode<synchronous>, transform_indices = @transform_3, window_bounds = array<i64: 32, 96>}, {pipeline_mode = #tpu.pipeline_mode<synchronous>, transform_indices = @transform_4, window_bounds = array<i64: 1, 96>}, {pipeline_mode = #tpu.pipeline_mode<synchronous>, transform_indices = @transform_5, window_bounds = array<i64: 32, 32>}, {pipeline_mode = #tpu.pipeline_mode<synchronous>, transform_indices = @transform_6, window_bounds = array<i64: 1, 32>}, {transform_indices = @transform_7, window_bounds = array<i64: 4, 4, 16, 16>}, {transform_indices = @transform_8, window_bounds = array<i64: 4, 16, 32>}]} {
    %c0 = arith.constant 0 : index
    %c0_0 = arith.constant 0 : index
    %c0_1 = arith.constant 0 : index
    %0 = vector.load %arg1[%c0, %c0_0, %c0_1] : memref<4x16x32xf32, #tpu.memory_space<vmem>>, vector<4x16x32xf32>
    %cst = arith.constant dense<0.000000e+00> : vector<4x16xf32>
    %1 = vector.multi_reduction <add>, %0, %cst [2] : vector<4x16x32xf32> to vector<4x16xf32>
    %2 = vector.shape_cast %1 : vector<4x16xf32> to vector<4x16x1xf32>
    %cst_2 = arith.constant 3.200000e+01 : f32
    %3 = vector.broadcast %cst_2 : f32 to vector<4x16x1xf32>
    %4 = arith.divf %2, %3 : vector<4x16x1xf32>
    %5 = vector.broadcast %4 : vector<4x16x1xf32> to vector<4x16x32xf32>
    %6 = arith.subf %0, %5 : vector<4x16x32xf32>
    %7 = arith.mulf %6, %6 : vector<4x16x32xf32>
    %cst_3 = arith.constant dense<0.000000e+00> : vector<4x16xf32>
    %8 = vector.multi_reduction <add>, %7, %cst_3 [2] : vector<4x16x32xf32> to vector<4x16xf32>
    %9 = vector.shape_cast %8 : vector<4x16xf32> to vector<4x16x1xf32>
    %cst_4 = arith.constant 3.200000e+01 : f32
    %10 = vector.broadcast %cst_4 : f32 to vector<4x16x1xf32>
    %11 = arith.divf %9, %10 : vector<4x16x1xf32>
    %12 = vector.broadcast %4 : vector<4x16x1xf32> to vector<4x16x32xf32>
    %13 = arith.subf %0, %12 : vector<4x16x32xf32>
    %cst_5 = arith.constant 9.99999974E-6 : f32
    %14 = vector.broadcast %cst_5 : f32 to vector<4x16x1xf32>
    %15 = arith.addf %11, %14 : vector<4x16x1xf32>
    %16 = math.rsqrt %15 : vector<4x16x1xf32>
    %17 = vector.broadcast %16 : vector<4x16x1xf32> to vector<4x16x32xf32>
    %18 = arith.mulf %13, %17 : vector<4x16x32xf32>
    %c0_6 = arith.constant 0 : index
    %c0_7 = arith.constant 0 : index
    %19 = vector.load %arg2[%c0_6, %c0_7] : memref<1x32xf32, #tpu.memory_space<vmem>>, vector<1x32xf32>
    %20 = vector.shape_cast %19 : vector<1x32xf32> to vector<1x1x32xf32>
    %21 = vector.broadcast %20 : vector<1x1x32xf32> to vector<4x16x32xf32>
    %22 = arith.mulf %18, %21 : vector<4x16x32xf32>
    %c0_8 = arith.constant 0 : index
    %c0_9 = arith.constant 0 : index
    %23 = vector.load %arg3[%c0_8, %c0_9] : memref<1x32xf32, #tpu.memory_space<vmem>>, vector<1x32xf32>
    %24 = vector.shape_cast %23 : vector<1x32xf32> to vector<1x1x32xf32>
    %25 = vector.broadcast %24 : vector<1x1x32xf32> to vector<4x16x32xf32>
    %26 = arith.addf %22, %25 : vector<4x16x32xf32>
    %27 = vector.shape_cast %26 : vector<4x16x32xf32> to vector<64x32xf32>
    %c0_10 = arith.constant 0 : index
    %c0_11 = arith.constant 0 : index
    %28 = vector.load %arg4[%c0_10, %c0_11] : memref<32x96xf32, #tpu.memory_space<vmem>>, vector<32x96xf32>
    %cst_12 = arith.constant dense<0.000000e+00> : vector<64x96xf32>
    %29 = tpu.matmul %27, %28, %cst_12 {dimension_numbers = #tpu.dot_dimension_numbers<[1], [0], [0], [1], [0, 0, 1, 1], [], []>} : vector<64x32xf32>, vector<32x96xf32>, vector<64x96xf32> -> vector<64x96xf32>
    %c0_13 = arith.constant 0 : index
    %c0_14 = arith.constant 0 : index
    %30 = vector.load %arg5[%c0_13, %c0_14] : memref<1x96xf32, #tpu.memory_space<vmem>>, vector<1x96xf32>
    %31 = vector.broadcast %30 : vector<1x96xf32> to vector<64x96xf32>
    %32 = arith.addf %29, %31 : vector<64x96xf32>
    %c0_15 = arith.constant 0 : index
    %c0_16 = arith.constant 0 : index
    %c0_17 = arith.constant 0 : index
    %c0_18 = arith.constant 0 : index
    %33 = vector.load %arg8[%c0_15, %c0_16, %c0_17, %c0_18] : memref<4x4x16x16xf32, #tpu.memory_space<vmem>>, vector<4x4x16x16xf32>
    %34 = vector.extract_strided_slice %32 {offsets = [0, 0], sizes = [64, 8], strides = [1, 1]} : vector<64x96xf32> to vector<64x8xf32>
    %35 = vector.shape_cast %34 : vector<64x8xf32> to vector<4x16x8xf32>
    %cst_19 = arith.constant 0.353553385 : f32
    %36 = vector.broadcast %cst_19 : f32 to vector<4x16x8xf32>
    %37 = arith.mulf %35, %36 : vector<4x16x8xf32>
    %38 = vector.extract_strided_slice %32 {offsets = [0, 32], sizes = [64, 8], strides = [1, 1]} : vector<64x96xf32> to vector<64x8xf32>
    %39 = vector.shape_cast %38 : vector<64x8xf32> to vector<4x16x8xf32>
    %40 = vector.extract_strided_slice %32 {offsets = [0, 64], sizes = [64, 8], strides = [1, 1]} : vector<64x96xf32> to vector<64x8xf32>
    %41 = vector.shape_cast %40 : vector<64x8xf32> to vector<4x16x8xf32>
    %cst_20 = arith.constant dense<0.000000e+00> : vector<4x16x16xf32>
    %42 = tpu.matmul %37, %39, %cst_20 {dimension_numbers = #tpu.dot_dimension_numbers<[2], [2], [1], [1], [0, 0, 0, 1, 1, 1], [0], [0]>} : vector<4x16x8xf32>, vector<4x16x8xf32>, vector<4x16x16xf32> -> vector<4x16x16xf32>
    %43 = vector.extract_strided_slice %33 {offsets = [0, 0, 0, 0], sizes = [4, 1, 16, 16], strides = [1, 1, 1, 1]} : vector<4x4x16x16xf32> to vector<4x1x16x16xf32>
    %44 = vector.shape_cast %43 : vector<4x1x16x16xf32> to vector<4x16x16xf32>
    %45 = arith.addf %42, %44 : vector<4x16x16xf32>
    %cst_21 = arith.constant dense<0xFF800000> : vector<4x16xf32>
    %46 = vector.multi_reduction <maximumf>, %45, %cst_21 [2] : vector<4x16x16xf32> to vector<4x16xf32>
    %47 = vector.shape_cast %46 : vector<4x16xf32> to vector<4x16x1xf32>
    %48 = vector.broadcast %47 : vector<4x16x1xf32> to vector<4x16x16xf32>
    %49 = arith.subf %45, %48 : vector<4x16x16xf32>
    %50 = math.exp %49 : vector<4x16x16xf32>
    %cst_22 = arith.constant dense<0.000000e+00> : vector<4x16xf32>
    %51 = vector.multi_reduction <add>, %50, %cst_22 [2] : vector<4x16x16xf32> to vector<4x16xf32>
    %52 = vector.shape_cast %51 : vector<4x16xf32> to vector<4x16x1xf32>
    %53 = tpu.reciprocal %52 {approx = true} : vector<4x16x1xf32> -> vector<4x16x1xf32>
    %54 = vector.broadcast %53 : vector<4x16x1xf32> to vector<4x16x16xf32>
    %55 = arith.mulf %50, %54 : vector<4x16x16xf32>
    %cst_23 = arith.constant dense<0.000000e+00> : vector<4x16x8xf32>
    %56 = tpu.matmul %55, %41, %cst_23 {dimension_numbers = #tpu.dot_dimension_numbers<[2], [1], [1], [2], [0, 0, 0, 1, 1, 2], [0], [0]>} : vector<4x16x16xf32>, vector<4x16x8xf32>, vector<4x16x8xf32> -> vector<4x16x8xf32>
    %57 = vector.shape_cast %56 : vector<4x16x8xf32> to vector<64x8xf32>
    %c0_24 = arith.constant 0 : index
    %c0_25 = arith.constant 0 : index
    %58 = vector.load %arg6[%c0_24, %c0_25] : memref<32x32xf32, #tpu.memory_space<vmem>>, vector<8x32xf32>
    %cst_26 = arith.constant dense<0.000000e+00> : vector<64x32xf32>
    %59 = tpu.matmul %57, %58, %cst_26 {dimension_numbers = #tpu.dot_dimension_numbers<[1], [0], [0], [1], [0, 0, 1, 1], [], []>} : vector<64x8xf32>, vector<8x32xf32>, vector<64x32xf32> -> vector<64x32xf32>
    %60 = vector.extract_strided_slice %32 {offsets = [0, 8], sizes = [64, 8], strides = [1, 1]} : vector<64x96xf32> to vector<64x8xf32>
    %61 = vector.shape_cast %60 : vector<64x8xf32> to vector<4x16x8xf32>
    %cst_27 = arith.constant 0.353553385 : f32
    %62 = vector.broadcast %cst_27 : f32 to vector<4x16x8xf32>
    %63 = arith.mulf %61, %62 : vector<4x16x8xf32>
    %64 = vector.extract_strided_slice %32 {offsets = [0, 40], sizes = [64, 8], strides = [1, 1]} : vector<64x96xf32> to vector<64x8xf32>
    %65 = vector.shape_cast %64 : vector<64x8xf32> to vector<4x16x8xf32>
    %66 = vector.extract_strided_slice %32 {offsets = [0, 72], sizes = [64, 8], strides = [1, 1]} : vector<64x96xf32> to vector<64x8xf32>
    %67 = vector.shape_cast %66 : vector<64x8xf32> to vector<4x16x8xf32>
    %cst_28 = arith.constant dense<0.000000e+00> : vector<4x16x16xf32>
    %68 = tpu.matmul %63, %65, %cst_28 {dimension_numbers = #tpu.dot_dimension_numbers<[2], [2], [1], [1], [0, 0, 0, 1, 1, 1], [0], [0]>} : vector<4x16x8xf32>, vector<4x16x8xf32>, vector<4x16x16xf32> -> vector<4x16x16xf32>
    %69 = vector.extract_strided_slice %33 {offsets = [0, 1, 0, 0], sizes = [4, 1, 16, 16], strides = [1, 1, 1, 1]} : vector<4x4x16x16xf32> to vector<4x1x16x16xf32>
    %70 = vector.shape_cast %69 : vector<4x1x16x16xf32> to vector<4x16x16xf32>
    %71 = arith.addf %68, %70 : vector<4x16x16xf32>
    %cst_29 = arith.constant dense<0xFF800000> : vector<4x16xf32>
    %72 = vector.multi_reduction <maximumf>, %71, %cst_29 [2] : vector<4x16x16xf32> to vector<4x16xf32>
    %73 = vector.shape_cast %72 : vector<4x16xf32> to vector<4x16x1xf32>
    %74 = vector.broadcast %73 : vector<4x16x1xf32> to vector<4x16x16xf32>
    %75 = arith.subf %71, %74 : vector<4x16x16xf32>
    %76 = math.exp %75 : vector<4x16x16xf32>
    %cst_30 = arith.constant dense<0.000000e+00> : vector<4x16xf32>
    %77 = vector.multi_reduction <add>, %76, %cst_30 [2] : vector<4x16x16xf32> to vector<4x16xf32>
    %78 = vector.shape_cast %77 : vector<4x16xf32> to vector<4x16x1xf32>
    %79 = tpu.reciprocal %78 {approx = true} : vector<4x16x1xf32> -> vector<4x16x1xf32>
    %80 = vector.broadcast %79 : vector<4x16x1xf32> to vector<4x16x16xf32>
    %81 = arith.mulf %76, %80 : vector<4x16x16xf32>
    %cst_31 = arith.constant dense<0.000000e+00> : vector<4x16x8xf32>
    %82 = tpu.matmul %81, %67, %cst_31 {dimension_numbers = #tpu.dot_dimension_numbers<[2], [1], [1], [2], [0, 0, 0, 1, 1, 2], [0], [0]>} : vector<4x16x16xf32>, vector<4x16x8xf32>, vector<4x16x8xf32> -> vector<4x16x8xf32>
    %83 = vector.shape_cast %82 : vector<4x16x8xf32> to vector<64x8xf32>
    %c8 = arith.constant 8 : index
    %c0_32 = arith.constant 0 : index
    %84 = vector.load %arg6[%c8, %c0_32] : memref<32x32xf32, #tpu.memory_space<vmem>>, vector<8x32xf32>
    %cst_33 = arith.constant dense<0.000000e+00> : vector<64x32xf32>
    %85 = tpu.matmul %83, %84, %cst_33 {dimension_numbers = #tpu.dot_dimension_numbers<[1], [0], [0], [1], [0, 0, 1, 1], [], []>} : vector<64x8xf32>, vector<8x32xf32>, vector<64x32xf32> -> vector<64x32xf32>
    %86 = arith.addf %59, %85 : vector<64x32xf32>
    %87 = vector.extract_strided_slice %32 {offsets = [0, 16], sizes = [64, 8], strides = [1, 1]} : vector<64x96xf32> to vector<64x8xf32>
    %88 = vector.shape_cast %87 : vector<64x8xf32> to vector<4x16x8xf32>
    %cst_34 = arith.constant 0.353553385 : f32
    %89 = vector.broadcast %cst_34 : f32 to vector<4x16x8xf32>
    %90 = arith.mulf %88, %89 : vector<4x16x8xf32>
    %91 = vector.extract_strided_slice %32 {offsets = [0, 48], sizes = [64, 8], strides = [1, 1]} : vector<64x96xf32> to vector<64x8xf32>
    %92 = vector.shape_cast %91 : vector<64x8xf32> to vector<4x16x8xf32>
    %93 = vector.extract_strided_slice %32 {offsets = [0, 80], sizes = [64, 8], strides = [1, 1]} : vector<64x96xf32> to vector<64x8xf32>
    %94 = vector.shape_cast %93 : vector<64x8xf32> to vector<4x16x8xf32>
    %cst_35 = arith.constant dense<0.000000e+00> : vector<4x16x16xf32>
    %95 = tpu.matmul %90, %92, %cst_35 {dimension_numbers = #tpu.dot_dimension_numbers<[2], [2], [1], [1], [0, 0, 0, 1, 1, 1], [0], [0]>} : vector<4x16x8xf32>, vector<4x16x8xf32>, vector<4x16x16xf32> -> vector<4x16x16xf32>
    %96 = vector.extract_strided_slice %33 {offsets = [0, 2, 0, 0], sizes = [4, 1, 16, 16], strides = [1, 1, 1, 1]} : vector<4x4x16x16xf32> to vector<4x1x16x16xf32>
    %97 = vector.shape_cast %96 : vector<4x1x16x16xf32> to vector<4x16x16xf32>
    %98 = arith.addf %95, %97 : vector<4x16x16xf32>
    %cst_36 = arith.constant dense<0xFF800000> : vector<4x16xf32>
    %99 = vector.multi_reduction <maximumf>, %98, %cst_36 [2] : vector<4x16x16xf32> to vector<4x16xf32>
    %100 = vector.shape_cast %99 : vector<4x16xf32> to vector<4x16x1xf32>
    %101 = vector.broadcast %100 : vector<4x16x1xf32> to vector<4x16x16xf32>
    %102 = arith.subf %98, %101 : vector<4x16x16xf32>
    %103 = math.exp %102 : vector<4x16x16xf32>
    %cst_37 = arith.constant dense<0.000000e+00> : vector<4x16xf32>
    %104 = vector.multi_reduction <add>, %103, %cst_37 [2] : vector<4x16x16xf32> to vector<4x16xf32>
    %105 = vector.shape_cast %104 : vector<4x16xf32> to vector<4x16x1xf32>
    %106 = tpu.reciprocal %105 {approx = true} : vector<4x16x1xf32> -> vector<4x16x1xf32>
    %107 = vector.broadcast %106 : vector<4x16x1xf32> to vector<4x16x16xf32>
    %108 = arith.mulf %103, %107 : vector<4x16x16xf32>
    %cst_38 = arith.constant dense<0.000000e+00> : vector<4x16x8xf32>
    %109 = tpu.matmul %108, %94, %cst_38 {dimension_numbers = #tpu.dot_dimension_numbers<[2], [1], [1], [2], [0, 0, 0, 1, 1, 2], [0], [0]>} : vector<4x16x16xf32>, vector<4x16x8xf32>, vector<4x16x8xf32> -> vector<4x16x8xf32>
    %110 = vector.shape_cast %109 : vector<4x16x8xf32> to vector<64x8xf32>
    %c16 = arith.constant 16 : index
    %c0_39 = arith.constant 0 : index
    %111 = vector.load %arg6[%c16, %c0_39] : memref<32x32xf32, #tpu.memory_space<vmem>>, vector<8x32xf32>
    %cst_40 = arith.constant dense<0.000000e+00> : vector<64x32xf32>
    %112 = tpu.matmul %110, %111, %cst_40 {dimension_numbers = #tpu.dot_dimension_numbers<[1], [0], [0], [1], [0, 0, 1, 1], [], []>} : vector<64x8xf32>, vector<8x32xf32>, vector<64x32xf32> -> vector<64x32xf32>
    %113 = arith.addf %86, %112 : vector<64x32xf32>
    %114 = vector.extract_strided_slice %32 {offsets = [0, 24], sizes = [64, 8], strides = [1, 1]} : vector<64x96xf32> to vector<64x8xf32>
    %115 = vector.shape_cast %114 : vector<64x8xf32> to vector<4x16x8xf32>
    %cst_41 = arith.constant 0.353553385 : f32
    %116 = vector.broadcast %cst_41 : f32 to vector<4x16x8xf32>
    %117 = arith.mulf %115, %116 : vector<4x16x8xf32>
    %118 = vector.extract_strided_slice %32 {offsets = [0, 56], sizes = [64, 8], strides = [1, 1]} : vector<64x96xf32> to vector<64x8xf32>
    %119 = vector.shape_cast %118 : vector<64x8xf32> to vector<4x16x8xf32>
    %120 = vector.extract_strided_slice %32 {offsets = [0, 88], sizes = [64, 8], strides = [1, 1]} : vector<64x96xf32> to vector<64x8xf32>
    %121 = vector.shape_cast %120 : vector<64x8xf32> to vector<4x16x8xf32>
    %cst_42 = arith.constant dense<0.000000e+00> : vector<4x16x16xf32>
    %122 = tpu.matmul %117, %119, %cst_42 {dimension_numbers = #tpu.dot_dimension_numbers<[2], [2], [1], [1], [0, 0, 0, 1, 1, 1], [0], [0]>} : vector<4x16x8xf32>, vector<4x16x8xf32>, vector<4x16x16xf32> -> vector<4x16x16xf32>
    %123 = vector.extract_strided_slice %33 {offsets = [0, 3, 0, 0], sizes = [4, 1, 16, 16], strides = [1, 1, 1, 1]} : vector<4x4x16x16xf32> to vector<4x1x16x16xf32>
    %124 = vector.shape_cast %123 : vector<4x1x16x16xf32> to vector<4x16x16xf32>
    %125 = arith.addf %122, %124 : vector<4x16x16xf32>
    %cst_43 = arith.constant dense<0xFF800000> : vector<4x16xf32>
    %126 = vector.multi_reduction <maximumf>, %125, %cst_43 [2] : vector<4x16x16xf32> to vector<4x16xf32>
    %127 = vector.shape_cast %126 : vector<4x16xf32> to vector<4x16x1xf32>
    %128 = vector.broadcast %127 : vector<4x16x1xf32> to vector<4x16x16xf32>
    %129 = arith.subf %125, %128 : vector<4x16x16xf32>
    %130 = math.exp %129 : vector<4x16x16xf32>
    %cst_44 = arith.constant dense<0.000000e+00> : vector<4x16xf32>
    %131 = vector.multi_reduction <add>, %130, %cst_44 [2] : vector<4x16x16xf32> to vector<4x16xf32>
    %132 = vector.shape_cast %131 : vector<4x16xf32> to vector<4x16x1xf32>
    %133 = tpu.reciprocal %132 {approx = true} : vector<4x16x1xf32> -> vector<4x16x1xf32>
    %134 = vector.broadcast %133 : vector<4x16x1xf32> to vector<4x16x16xf32>
    %135 = arith.mulf %130, %134 : vector<4x16x16xf32>
    %cst_45 = arith.constant dense<0.000000e+00> : vector<4x16x8xf32>
    %136 = tpu.matmul %135, %121, %cst_45 {dimension_numbers = #tpu.dot_dimension_numbers<[2], [1], [1], [2], [0, 0, 0, 1, 1, 2], [0], [0]>} : vector<4x16x16xf32>, vector<4x16x8xf32>, vector<4x16x8xf32> -> vector<4x16x8xf32>
    %137 = vector.shape_cast %136 : vector<4x16x8xf32> to vector<64x8xf32>
    %c24 = arith.constant 24 : index
    %c0_46 = arith.constant 0 : index
    %138 = vector.load %arg6[%c24, %c0_46] : memref<32x32xf32, #tpu.memory_space<vmem>>, vector<8x32xf32>
    %cst_47 = arith.constant dense<0.000000e+00> : vector<64x32xf32>
    %139 = tpu.matmul %137, %138, %cst_47 {dimension_numbers = #tpu.dot_dimension_numbers<[1], [0], [0], [1], [0, 0, 1, 1], [], []>} : vector<64x8xf32>, vector<8x32xf32>, vector<64x32xf32> -> vector<64x32xf32>
    %140 = arith.addf %113, %139 : vector<64x32xf32>
    %c0_48 = arith.constant 0 : index
    %c0_49 = arith.constant 0 : index
    %141 = vector.load %arg7[%c0_48, %c0_49] : memref<1x32xf32, #tpu.memory_space<vmem>>, vector<1x32xf32>
    %142 = vector.broadcast %141 : vector<1x32xf32> to vector<64x32xf32>
    %143 = arith.addf %140, %142 : vector<64x32xf32>
    %144 = vector.shape_cast %143 : vector<64x32xf32> to vector<4x16x32xf32>
    %c0_50 = arith.constant 0 : index
    %c0_51 = arith.constant 0 : index
    %c0_52 = arith.constant 0 : index
    %145 = vector.load %arg9[%c0_50, %c0_51, %c0_52] : memref<4x16x32xf32, #tpu.memory_space<vmem>>, vector<4x16x32xf32>
    tpu.vector_store %arg9[%c0_50, %c0_51, %c0_52], %144 {strides = array<i32>} : memref<4x16x32xf32, #tpu.memory_space<vmem>>, vector<4x16x32xf32>,
    return
  }
  func.func @transform_0(%arg0: i32) -> (i32, i32, i32) {
    %c0_i32 = arith.constant 0 : i32
    %c0_i32_0 = arith.constant 0 : i32
    %c0_i32_1 = arith.constant 0 : i32
    return %arg0, %c0_i32, %c0_i32_0 : i32, i32, i32
  }
  func.func @transform_1(%arg0: i32) -> (i32, i32) {
    %c0_i32 = arith.constant 0 : i32
    %c0_i32_0 = arith.constant 0 : i32
    %c0_i32_1 = arith.constant 0 : i32
    return %c0_i32, %c0_i32_0 : i32, i32
  }
  func.func @transform_2(%arg0: i32) -> (i32, i32) {
    %c0_i32 = arith.constant 0 : i32
    %c0_i32_0 = arith.constant 0 : i32
    %c0_i32_1 = arith.constant 0 : i32
    return %c0_i32, %c0_i32_0 : i32, i32
  }
  func.func @transform_3(%arg0: i32) -> (i32, i32) {
    %c0_i32 = arith.constant 0 : i32
    %c0_i32_0 = arith.constant 0 : i32
    %c0_i32_1 = arith.constant 0 : i32
    return %c0_i32, %c0_i32_0 : i32, i32
  }
  func.func @transform_4(%arg0: i32) -> (i32, i32) {
    %c0_i32 = arith.constant 0 : i32
    %c0_i32_0 = arith.constant 0 : i32
    %c0_i32_1 = arith.constant 0 : i32
    return %c0_i32, %c0_i32_0 : i32, i32
  }
  func.func @transform_5(%arg0: i32) -> (i32, i32) {
    %c0_i32 = arith.constant 0 : i32
    %c0_i32_0 = arith.constant 0 : i32
    %c0_i32_1 = arith.constant 0 : i32
    return %c0_i32, %c0_i32_0 : i32, i32
  }
  func.func @transform_6(%arg0: i32) -> (i32, i32) {
    %c0_i32 = arith.constant 0 : i32
    %c0_i32_0 = arith.constant 0 : i32
    %c0_i32_1 = arith.constant 0 : i32
    return %c0_i32, %c0_i32_0 : i32, i32
  }
  func.func @transform_7(%arg0: i32) -> (i32, i32, i32, i32) {
    %c1_i32 = arith.constant 1 : i32
    %c0_i32 = arith.constant 0 : i32
    %0 = arith.cmpi eq, %c1_i32, %c0_i32 : i32
    %c1_i32_0 = arith.constant 1 : i32
    %1 = arith.select %0, %c1_i32_0, %c1_i32 : i32
    %2 = arith.remsi %arg0, %1 : i32
    %c0_i32_1 = arith.constant 0 : i32
    %3 = arith.cmpi ne, %2, %c0_i32_1 : i32
    %c0_i32_2 = arith.constant 0 : i32
    %4 = arith.cmpi slt, %2, %c0_i32_2 : i32
    %c0_i32_3 = arith.constant 0 : i32
    %5 = arith.cmpi slt, %1, %c0_i32_3 : i32
    %6 = arith.xori %4, %5 : i1
    %7 = arith.andi %6, %3 : i1
    %8 = arith.addi %2, %1 : i32
    %9 = arith.select %7, %8, %2 : i32
    %c0_i32_4 = arith.constant 0 : i32
    %c0_i32_5 = arith.constant 0 : i32
    %c0_i32_6 = arith.constant 0 : i32
    %c0_i32_7 = arith.constant 0 : i32
    return %9, %c0_i32_4, %c0_i32_5, %c0_i32_6 : i32, i32, i32, i32
  }
  func.func @transform_8(%arg0: i32) -> (i32, i32, i32) {
    %c0_i32 = arith.constant 0 : i32
    %c0_i32_0 = arith.constant 0 : i32
    %c0_i32_1 = arith.constant 0 : i32
    return %arg0, %c0_i32, %c0_i32_0 : i32, i32, i32
  }
}

</mosaic_0001>

<bundles_post_ra>
// kernel: tpu_custom_call.1
= control target key start
LH: loop header
LB: loop body
LE: loop exit
PB: predicated region body
PF: predicated region fallthrough
CT: control target
= control target key end

     0   :  { %13 = vsyncpa [#allocation3], 0  ;;  %s6907_s0 = inlined_call_operand.hbm [shape: f32[8,16,32], index: 0, kind: input, shape index: {}]   ;;  %s6908_s1 = inlined_call_operand.vmem [shape: f32[1,32], index: 1, kind: input, shape index: {}]   ;;  %s6909_s2 = inlined_call_operand.vmem [shape: f32[1,32], index: 2, kind: input, shape index: {}]   ;;  %s6910_s3 = inlined_call_operand.hbm [shape: f32[32,96], index: 3, kind: input, shape index: {}]   ;;  %s6911_s4 = inlined_call_operand.vmem [shape: f32[1,96], index: 4, kind: input, shape index: {}]   ;;  %s6912_s5 = inlined_call_operand.hbm [shape: f32[32,32], index: 5, kind: input, shape index: {}]   ;;  %s6913_s6 = inlined_call_operand.vmem [shape: f32[1,32], index: 6, kind: input, shape index: {}]   ;;  %s6914_s7 = inlined_call_operand.hbm [shape: f32[4,4,16,16], index: 7, kind: input, shape index: {}]   ;;  %s6915_s8 = inlined_call_operand.hbm [shape: f32[8,16,32], index: 8, kind: output, shape index: {}]  }
   0x1   :  { %15 = vsyncpa [#allocation3 + $0x1], 0 }
   0x2   :  { %16 = vsyncpa [#allocation6], 0 }
   0x3   :  { %17 = vsyncpa [#allocation9], 0 }
   0x4   :  { %18 = vsyncpa [#allocation4], 0 }
   0x5   :  { %20 = vsyncpa [#allocation4 + $0x1], 0  ;;  %s6060_s27 = smov 0   ;;  %s6062_s28 = smov 0  }
   0x6   :  { %s6064_s29 = smov 0   ;;  %s6066_s30 = smov 0  }
   0x7 LB: > { %6921 = sst [smem:[#allocation15_spill]] %s5981_s27  ;;  %s6081_s9 = sadd.s32 4294967295, %s5993_s30   ;;  %s5993_s30 = sphi %s6066_s30, %s6946_s30   ;;  %s5989_s29 = sphi %s6064_s29, %s6945_s29   ;;  %s5985_s28 = sphi %s6062_s28, %s6944_s28   ;;  %s5981_s27 = sphi %s6060_s27, %s6943_s27  }
   0x8   : > { %s4573_s10 = sadd.s32 4294967294, %s5993_s30   ;;  %p46_p0 = scmp.ne.s32.totalorder %s5985_s28, %s5981_s27 }
   0x9   : > { %p6916_p1 = scmp.eq.s32.totalorder %s6081_s9, 0  ;;  %p223_p3 = scmp.eq.s32.totalorder %s4573_s10, 1 }
   0xa   : > { %p4574_p5 = scmp.ge.s32.totalorder %s5993_s30, 1  ;;  %p230_p7 = scmp.lt.s32.totalorder %s5993_s30, 3 }
   0xb   : > { %p6090_p4 = por %p6916_p1, %p46_p0  ;;  %p6095_p6 = por %p223_p3, %p46_p0 }
   0xc   : > { %p6100_p8 = pnand %p4574_p5, %p230_p7  ;;  %s5995_s14 = smov [#allocation5]  }
   0xd   : > { %s6922_s11 = scalar_select %p6090_p4, 1, 0 }
   0xe   : > { %s6923_s12 = scalar_select %p6095_p6, 1, 0 }
   0xf   : > { %s6925_s13 = scalar_select %p6100_p8, 1, 0 }
  0x10   : > { %6924 = sst [smem:[#allocation16_spill]] %s6923_s12  ;;  %s248_s15 = sshll.u32 %s5995_s14, 4  ;;  %s6104_s15 = int_to_ptr.vmem [resolvable:$true] %s248_s15 }
  0x11   : > { %p5425_p9 = pneg %p6100_p8  ;;  %s5996_s17 = smov [#allocation7]  }
  0x12   : > { %s264_s18 = sshll.u32 %s5996_s17, 4  ;;  %s5997_s19 = smov [#allocation8]   ;;  %s6115_s18 = int_to_ptr.vmem [resolvable:$true] %s264_s18 }
  0x13   : > { %p6111_p11 = pnand %p5425_p9, %p6916_p1  ;;  %s6117_s20 = sshll.u32 %s5997_s19, 4  ;;  %s281_s20 = int_to_ptr.vmem [resolvable:$true] %s6117_s20 }
  0x14   : > { %s5805_s23 = scalar_lea.hbm %s6910_s3, 512 }
  0x15   : > { %p5806_p12 = scmp.ne.s32.totalorder %s6910_s3, %s5805_s23  ;;  %p6127_p13 = pneg %p6111_p11 }
  0x16   : > { %p5812_p5 = scmp.lt.u32.totalorder %s5805_s23, %s6910_s3 }
  0x17   : > { %p5808_p0 = pnand %p6127_p13, %p5806_p12 }
  0x19   : > { %p5809_p3 = pneg %p5808_p0 }
  0x1b   : > { %p5814_p7 = pnand %p5812_p5, %p5809_p3 }
  0x1d   : > { %5817 = shalt.err (!%p5814_p7)
}
  0x1e   : > { %s5818_s17 = scalar_lea.vmem %s6104_s15, 512  ;;  %p5826_p2 = scmp.lt.s32.totalorder %s6104_s15, %s6104_s15 }
  0x1f   : > { %p5819_p9 = scmp.ne.s32.totalorder %s6104_s15, %s5818_s17  ;;  %p5827_p6 = scmp.lt.s32.totalorder %s5818_s17, %s5818_s17 }
  0x21   : > { %p5821_p10 = pnand %p5819_p9, %p6127_p13  ;;  %p5828_p12 = por %p5827_p6, %p5826_p2 }
  0x23   : > { %p5822_p1 = pneg %p5821_p10 }
  0x25   : > { %p5829_p0 = pnand %p5828_p12, %p5822_p1 }
  0x27   : > { %5832 = shalt.err (!%p5829_p0)
}
  0x28   : > { %s5998_s19 = smov 128   ;;  %s5999_s21 = smov 8  }
  0x29   : > { %5428 = dma.hbm_to_vmem [thread:$0]  (!%p6111_p11), %s6910_s3, 512, %s6104_s15, [#allocation6], %s5998_s19, %s5998_s19, %s5999_s21  }
  0x2a   : > { %s5833_s10 = scalar_lea.hbm %s6912_s5, 512 }
  0x2b   : > { %p5834_p1 = scmp.ne.s32.totalorder %s6912_s5, %s5833_s10  ;;  %p5840_p10 = scmp.lt.u32.totalorder %s5833_s10, %s6912_s5 }
  0x2d   : > { %p5836_p2 = pnand %p5834_p1, %p6127_p13 }
  0x2f   : > { %p5837_p6 = pneg %p5836_p2 }
  0x31   : > { %p5842_p3 = pnand %p5840_p10, %p5837_p6 }
  0x33   : > { %5845 = shalt.err (!%p5842_p3)
}
  0x34   : > { %s5846_s15 = scalar_lea.vmem %s6115_s18, 512  ;;  %p5854_p12 = scmp.lt.s32.totalorder %s6115_s18, %s6115_s18 }
  0x35   : > { %p5847_p5 = scmp.ne.s32.totalorder %s6115_s18, %s5846_s15  ;;  %p5855_p0 = scmp.lt.s32.totalorder %s5846_s15, %s5846_s15 }
  0x37   : > { %p5849_p7 = pnand %p5847_p5, %p6127_p13  ;;  %p5856_p1 = por %p5855_p0, %p5854_p12 }
  0x39   : > { %p5850_p9 = pneg %p5849_p7 }
  0x3b   : > { %p5857_p2 = pnand %p5856_p1, %p5850_p9 }
  0x3d   : > { %5860 = shalt.err (!%p5857_p2)
}
  0x3e   : > { %5431 = dma.hbm_to_vmem [thread:$0]  (!%p6111_p11), %s6912_s5, 512, %s6115_s18, [#allocation6], %s5998_s19, %s5998_s19, %s5999_s21  }
  0x3f   : > { %s5861_s24 = scalar_lea.hbm %s6914_s7, 4096 }
  0x40   : > { %p5862_p6 = scmp.ne.s32.totalorder %s6914_s7, %s5861_s24  ;;  %p5868_p5 = scmp.lt.u32.totalorder %s5861_s24, %s6914_s7 }
  0x42   : > { %p5864_p10 = pnand %p5862_p6, %p6127_p13 }
  0x44   : > { %p5865_p3 = pneg %p5864_p10 }
  0x46   : > { %p5870_p7 = pnand %p5868_p5, %p5865_p3 }
  0x48   : > { %5873 = shalt.err (!%p5870_p7)
}
  0x49   : > { %s5874_s15 = scalar_lea.vmem %s281_s20, 4096  ;;  %p5882_p1 = scmp.lt.s32.totalorder %s281_s20, %s281_s20 }
  0x4a   : > { %p5875_p9 = scmp.ne.s32.totalorder %s281_s20, %s5874_s15  ;;  %p5883_p2 = scmp.lt.s32.totalorder %s5874_s15, %s5874_s15 }
  0x4c   : > { %p5877_p12 = pnand %p5875_p9, %p6127_p13  ;;  %p5884_p4 = por %p5883_p2, %p5882_p1 }
  0x4e   : > { %p5878_p0 = pneg %p5877_p12 }
  0x50   : > { %p5885_p8 = pnand %p5884_p4, %p5878_p0 }
  0x52   : > { %5888 = shalt.err (!%p5885_p8)
}
  0x53   : > { %5434 = dma.hbm_to_vmem [thread:$0]  (!%p6111_p11), %s6914_s7, 4096, %s281_s20, [#allocation9], %s5998_s19, %s5998_s19, %s5999_s21  }
  0x54   : > { %s6200_s26 = sadd.s32 1, %s5993_s30   ;;  %s33_s12 = sadd.s32 1, %s5989_s29 }
  0x55   : > { %s30_s16 = ssub.s32 %s5993_s30, %s6200_s26  ;;  %p40_p8 = scmp.ne.s32.totalorder %s5989_s29, %s5985_s28 }
  0x56   : > { %p31_p4 = scmp.eq.s32.totalorder %s30_s16, 0  ;;  %p41_p13 = scmp.eq.s32.totalorder %s5993_s30, 0 }
  0x57   : > { %p5446_p6 = scmp.lt.s32.totalorder %s5993_s30, 2  ;;  %p6928_p3 = scmp.eq.s32.totalorder %s6081_s9, 1 }
  0x58   : > { %s6210_s22 = scalar_select %p31_p4, %s5989_s29, %s33_s12  }
  0x59   : > { %p42_p10 = por %p41_p13, %p40_p8  ;;  %p6214_p5 = por %p6928_p3, %p40_p8 }
  0x5a   : > { %s294_s24 = sand.u32 1, %s5989_s29   ;;  %s4736_s25 = sshll.u32 %s5993_s30, 10 }
  0x5b   : > { %s4579_s20 = sshll.u32 %s294_s24, 6  ;;  %s6223_s17 = scalar_lea.hbm %s6907_s0, %s4736_s25 }
  0x5c   : > { %s298_s15 = scalar_lea.vmem [#allocation2], %s4579_s20  ;;  %p6225_p11 = pnand %p5446_p6, %p42_p10 }
  0x5d   : > { %s306_s18 = sshll.u32 %s298_s15, 4  ;;  %s6231_s16 = scalar_lea.sflag [#allocation3], %s294_s24  ;;  %s6229_s18 = int_to_ptr.vmem [resolvable:$true] %s306_s18 }
  0x5e   : > { %s5889_s12 = scalar_lea.hbm %s6223_s17, 1024  ;;  %p5891_p9 = pneg %p6225_p11 }
  0x5f   : > { %p5890_p7 = scmp.ne.s32.totalorder %s6223_s17, %s5889_s12  ;;  %s5894_s10 = scalar_lea.hbm %s6907_s0, 2048 }
  0x60   : > { %p5895_p1 = scmp.lt.u32.totalorder %s6223_s17, %s6907_s0  ;;  %p5896_p2 = scmp.lt.u32.totalorder %s5894_s10, %s5889_s12 }
  0x61   : > { %p5892_p12 = pnand %p5891_p9, %p5890_p7  ;;  %p5898_p8 = scmp.lt.u32.totalorder %s5889_s12, %s6223_s17 }
  0x62   : > { %p5897_p4 = por %p5896_p2, %p5895_p1 }
  0x63   : > { %p5893_p0 = pneg %p5892_p12 }
  0x64   : > { %p5899_p13 = por %p5898_p8, %p5897_p4 }
  0x66   : > { %p5900_p6 = pnand %p5899_p13, %p5893_p0 }
  0x68   : > { %5903 = shalt.err (!%p5900_p6)
}
  0x69   : > { %s5904_s24 = scalar_lea.vmem %s6229_s18, 1024  ;;  %s6000_s25 = smov [#allocation2]  }
  0x6a   : > { %p5905_p10 = scmp.ne.s32.totalorder %s6229_s18, %s5904_s24  ;;  %s5909_s20 = sshll.u32 %s6000_s25, 4  ;;  %s5910_s20 = int_to_ptr.vmem [resolvable:$false] %s5909_s20 }
  0x6b   : > { %s5911_s14 = scalar_lea.vmem %s5910_s20, 2048  ;;  %p5912_p12 = scmp.lt.s32.totalorder %s6229_s18, %s5910_s20 }
  0x6c   : > { %p5907_p3 = pnand %p5905_p10, %p5891_p9  ;;  %p5913_p1 = scmp.lt.s32.totalorder %s5911_s14, %s5904_s24 }
  0x6e   : > { %p5908_p7 = pneg %p5907_p3  ;;  %p5914_p2 = por %p5913_p1, %p5912_p12 }
  0x70   : > { %p5915_p4 = pnand %p5914_p2, %p5908_p7 }
  0x72   : > { %5918 = shalt.err (!%p5915_p4)
}
  0x73   : > { %5438 = dma.hbm_to_vmem [thread:$0]  (!%p6225_p11), %s6223_s17, 1024, %s6229_s18, %s6231_s16, %s5998_s19, %s5998_s19, %s5999_s21  }
  0x74   : > { %p6931_p9 = scmp.ne.s32.totalorder %s6925_s13, 0 }
  0x75   : > { %s6265_s12 = sand.u32 (!%p6931_p9), 1, %s5985_s28   ;;  %p6932_p0 = scmp.ne.s32.totalorder (!%p6931_p9), %s6922_s11, 0 }
  0x76   : > { %318 = sbr.rel (%p6931_p9) target bundleno = 3900 (0xf3c), region = 52  ;;  %s4584_s10 = sshll.u32 (!%p6931_p9), %s6265_s12, 6 }
  0x77   : > { %s321_s15 = scalar_lea.sflag (!%p6931_p9), [#allocation3], %s6265_s12  ;;  %s324_s27 = scalar_lea.vmem (!%p6931_p9), [#allocation2], %s4584_s10 }
  0x7d   : > { %5964 = dma.done.wait (%p6932_p0), %s321_s15, 1024  }
  0x7e   : > { %5966 = vsyncadd (%p6932_p0), %s321_s15, 4294966272  ;;  %p6933_p11 = scmp.eq.s32.totalorder %s6081_s9, 0 }
  0x80   : > { %5968 = dma.done.wait (%p6933_p11), [#allocation6], 1024   ;;  %p6934_p8 = pmov %p6933_p11 }
  0x82   : > { %5970 = vsyncadd (%p6934_p8), [#allocation6], 4294966272  ;;  %p6935_p13 = pmov %p6934_p8 }
  0x83   : > { %p6936_p6 = pmov %p6934_p8 }
  0x84   : > { %5972 = dma.done.wait (%p6935_p13), [#allocation9], 4096  }
  0x85   : > { %5974 = vsyncadd (%p6936_p6), [#allocation9], 4294963200  ;;  %vm379_vm0 = vcmask 261120   ;;  %v371_v0 = vld [vmem:[%s324_s27] sm:$0xff]  ;;  %v373_v1 = vld [vmem:[%s324_s27 + $0x10] sm:$0xff]  ;;  %vm701_vm1 = vcmask 64512  }
  0x86   : > { %v372_v2 = vld [vmem:[%s324_s27 + $0x8] sm:$0xff]  ;;  %v380_v3 = vsel %vm379_vm0, %v371_v0, 0.0  ;;  %v386_v4 = vsel %vm379_vm0, %v373_v1, 0.0  ;;  %v374_v5 = vld [vmem:[%s324_s27 + $0x18] sm:$0xff]  ;;  %v375_v8 = vld [vmem:[%s324_s27 + $0x20] sm:$0xff]  ;;  %s6001_s16 = smov 96  }
  0x87   : > { %381 = vadd.xlane.f32.xlu0 %v380_v3  ;;  %387 = vadd.xlane.f32.xlu1 %v386_v4  ;;  %v383_v6 = vsel %vm379_vm0, %v372_v2, 0.0  ;;  %v389_v7 = vsel %vm379_vm0, %v374_v5, 0.0  ;;  %v376_v9 = vld [vmem:[%s324_s27 + $0x28] sm:$0xff]  ;;  %v392_v10 = vsel %vm379_vm0, %v375_v8, 0.0  ;;  %v377_v12 = vld [vmem:[%s324_s27 + $0x30] sm:$0xff]  ;;  %v378_v13 = vld [vmem:[%s324_s27 + $0x38] sm:$0xff] }
  0x88   : > { %v395_v11 = vsel %vm379_vm0, %v376_v9, 0.0  ;;  %v398_v14 = vsel %vm379_vm0, %v377_v12, 0.0  ;;  %v401_v15 = vsel %vm379_vm0, %v378_v13, 0.0  ;;  %v515_v56 = vld [vmem:[#allocation5] sm:$0xff]  ;;  %v516_v57 = vld [vmem:[#allocation5 + $0x8] sm:$0xff]  ;;  %v517_v59 = vld [vmem:[#allocation5 + $0x10] sm:$0xff] }
  0x89   : > { %v5215_v58 = vpack.c.bf16 %v516_v57, %v515_v56  ;;  %v518_v60 = vld [vmem:[#allocation5 + $0x18] sm:$0xff]  ;;  %vm6378_vm2 = vmpackc.low %vm701_vm1, %vm701_vm1  ;;  %vm1060_vm3 = vcmask 130048   ;;  %s6002_s24 = smov 64   ;;  %s6003_s25 = smov 88  }
  0x8a   : > { %v5219_v61 = vpack.c.bf16 %v518_v60, %v517_v59  ;;  %s6004_s20 = smov 120   ;;  %s6005_s14 = smov 56  }
  0x8b   : > { %384 = vadd.xlane.f32.xlu0 %v383_v6  ;;  %390 = vadd.xlane.f32.xlu1 %v389_v7  ;;  %s6006_s15 = smov 80   ;;  %s6007_s27 = smov 112  }
  0x8c   : > { %5216 = vmatprep.subr.bf16.mxu0 %v5215_v58  ;;  %s6008_s11 = smov 48   ;;  %s6009_s13 = smov 72  }
  0x8d   : > { %5218 = vmatpush3.bf16.msra.mxu0 %v5215_v58  ;;  %s6010_s19 = smov 104   ;;  %s6011_s21 = smov 40  }
  0x8e   : > { %5220 = vmatprep.subr.bf16.mxu0 %v5219_v61 }
  0x8f   : > { %393 = vadd.xlane.f32.xlu0 %v392_v10  ;;  %396 = vadd.xlane.f32.xlu1 %v395_v11 }
  0x91   : > { %5222 = vmatpush3.bf16.msra.mxu0 %v5219_v61 }
  0x93   : > { %399 = vadd.xlane.f32.xlu0 %v398_v14  ;;  %402 = vadd.xlane.f32.xlu1 %v401_v15 }
 0x114   : > { %v382_v16 = vpop.xlane.xlu0 %381  ;;  %v388_v17 = vpop.xlane.xlu1 %387 }
 0x115   : > { %v405_v18 = vmul.f32 0.03125, %v382_v16  ;;  %v407_v19 = vmul.f32 0.03125, %v388_v17 }
 0x117   : > { %v6291_v20 = vsub.f32 %v371_v0, %v405_v18  ;;  %v6293_v21 = vsub.f32 %v373_v1, %v407_v19 }
 0x118   : > { %v385_v22 = vpop.xlane.xlu0 %384  ;;  %v391_v23 = vpop.xlane.xlu1 %390 }
 0x119   : > { %v406_v24 = vmul.f32 0.03125, %v385_v22  ;;  %v408_v25 = vmul.f32 0.03125, %v391_v23  ;;  %v421_v26 = vmul.f32 %v6291_v20, %v6291_v20  ;;  %v423_v27 = vmul.f32 %v6293_v21, %v6293_v21  ;;  %v4589_v22 = vld [vmem:[%s6908_s1] ss:$0 sm:$0xff] }
 0x11b   : > { %v6299_v28 = vsub.f32 %v372_v2, %v406_v24  ;;  %v6301_v29 = vsub.f32 %v374_v5, %v408_v25  ;;  %v429_v30 = vsel %vm379_vm0, %v421_v26, 0.0  ;;  %v435_v33 = vsel %vm379_vm0, %v423_v27, 0.0  ;;  %v4590_v26 = vld [vmem:[%s6909_s2] ss:$0 sm:$0xff] }
 0x11c   : > { %430 = vadd.xlane.f32.xlu0 %v429_v30  ;;  %v394_v31 = vpop.xlane.xlu0 %393  ;;  %v397_v32 = vpop.xlane.xlu1 %396 }
 0x11d   : > { %v409_v34 = vmul.f32 0.03125, %v394_v31  ;;  %v410_v35 = vmul.f32 0.03125, %v397_v32  ;;  %v422_v36 = vmul.f32 %v6299_v28, %v6299_v28  ;;  %v424_v37 = vmul.f32 %v6301_v29, %v6301_v29 }
 0x11f   : > { %v6309_v38 = vsub.f32 %v375_v8, %v409_v34  ;;  %v6311_v39 = vsub.f32 %v376_v9, %v410_v35  ;;  %v432_v40 = vsel %vm379_vm0, %v422_v36, 0.0  ;;  %v438_v43 = vsel %vm379_vm0, %v424_v37, 0.0 }
 0x120   : > { %436 = vadd.xlane.f32.xlu0 %v435_v33  ;;  %433 = vadd.xlane.f32.xlu1 %v432_v40  ;;  %v400_v41 = vpop.xlane.xlu0 %399  ;;  %v403_v42 = vpop.xlane.xlu1 %402 }
 0x121   : > { %v411_v44 = vmul.f32 0.03125, %v400_v41  ;;  %v412_v45 = vmul.f32 0.03125, %v403_v42  ;;  %v425_v46 = vmul.f32 %v6309_v38, %v6309_v38  ;;  %v426_v47 = vmul.f32 %v6311_v39, %v6311_v39 }
 0x123   : > { %v6319_v48 = vsub.f32 %v377_v12, %v411_v44  ;;  %v6321_v49 = vsub.f32 %v378_v13, %v412_v45  ;;  %v441_v50 = vsel %vm379_vm0, %v425_v46, 0.0  ;;  %v444_v51 = vsel %vm379_vm0, %v426_v47, 0.0 }
 0x124   : > { %439 = vadd.xlane.f32.xlu1 %v438_v43  ;;  %442 = vadd.xlane.f32.xlu0 %v441_v50 }
 0x125   : > { %v427_v52 = vmul.f32 %v6319_v48, %v6319_v48  ;;  %v428_v53 = vmul.f32 %v6321_v49, %v6321_v49 }
 0x127   : > { %v447_v54 = vsel %vm379_vm0, %v427_v52, 0.0  ;;  %v450_v55 = vsel %vm379_vm0, %v428_v53, 0.0 }
 0x128   : > { %445 = vadd.xlane.f32.xlu1 %v444_v51  ;;  %448 = vadd.xlane.f32.xlu0 %v447_v54 }
 0x12c   : > { %451 = vadd.xlane.f32.xlu1 %v450_v55 }
 0x1a9   : > { %v431_v62 = vpop.xlane.xlu0 %430 }
 0x1aa   : > { %v453_v63 = vmul.f32 0.03125, %v431_v62 }
 0x1ac   : > { %v461_v0 = vadd.f32 1e-05, %v453_v63 }
 0x1ad   : > { %v434_v1 = vpop.xlane.xlu1 %433  ;;  %v437_v2 = vpop.xlane.xlu0 %436 }
 0x1ae   : > { %5661 = vrsqrt.f32 %v461_v0  ;;  %v454_v3 = vmul.f32 0.03125, %v434_v1  ;;  %v455_v4 = vmul.f32 0.03125, %v437_v2 }
 0x1b0   : > { %v462_v5 = vadd.f32 1e-05, %v454_v3  ;;  %v463_v6 = vadd.f32 1e-05, %v455_v4 }
 0x1b1   : > { %v440_v7 = vpop.xlane.xlu1 %439  ;;  %v443_v8 = vpop.xlane.xlu0 %442 }
 0x1b2   : > { %5663 = vrsqrt.f32 %v462_v5  ;;  %v456_v9 = vmul.f32 0.03125, %v440_v7  ;;  %v457_v10 = vmul.f32 0.03125, %v443_v8 }
 0x1b3   : > { %5665 = vrsqrt.f32 %v463_v6 }
 0x1b4   : > { %v464_v11 = vadd.f32 1e-05, %v456_v9  ;;  %v465_v12 = vadd.f32 1e-05, %v457_v10 }
 0x1b5   : > { %v446_v13 = vpop.xlane.xlu1 %445  ;;  %v449_v14 = vpop.xlane.xlu0 %448 }
 0x1b6   : > { %5667 = vrsqrt.f32 %v464_v11  ;;  %v458_v15 = vmul.f32 0.03125, %v446_v13  ;;  %v459_v16 = vmul.f32 0.03125, %v449_v14 }
 0x1b7   : > { %5669 = vrsqrt.f32 %v465_v12 }
 0x1b8   : > { %v5662_v17 = vpop.eup %5661  ;;  %v466_v18 = vadd.f32 1e-05, %v458_v15  ;;  %v467_v19 = vadd.f32 1e-05, %v459_v16 }
 0x1b9   : > { %v452_v23 = vpop.xlane.xlu1 %451  ;;  %v477_v24 = vmul.f32 %v5662_v17, %v6291_v20 }
 0x1ba   : > { %5671 = vrsqrt.f32 %v466_v18  ;;  %v460_v25 = vmul.f32 0.03125, %v452_v23  ;;  %v662_v18 = vld [vmem:[#allocation8 + $0x38] sm:$0xff] }
 0x1bb   : > { %5673 = vrsqrt.f32 %v467_v19  ;;  %v492_v27 = vmul.f32 %v4589_v22, %v477_v24 }
 0x1bc   : > { %v5664_v30 = vpop.eup %5663  ;;  %v468_v31 = vadd.f32 1e-05, %v460_v25 }
 0x1bd   : > { %v5666_v32 = vpop.eup %5665  ;;  %v507_v33 = vadd.f32 %v4590_v26, %v492_v27  ;;  %v478_v34 = vmul.f32 %v5664_v30, %v6299_v28 }
 0x1be   : > { %5675 = vrsqrt.f32 %v468_v31  ;;  %v479_v35 = vmul.f32 %v5666_v32, %v6293_v21 }
 0x1bf   : > { %4923 = vmatprep.mubr.msk.f32.mxu0 %vm379_vm0, %v507_v33  ;;  %v493_v20 = vmul.f32 %v4589_v22, %v478_v34 }
 0x1c0   : > { %v5668_v36 = vpop.eup %5667  ;;  %v494_v37 = vmul.f32 %v4589_v22, %v479_v35 }
 0x1c1   : > { %v5670_v40 = vpop.eup %5669  ;;  %v508_v41 = vadd.f32 %v4590_v26, %v493_v20  ;;  %v480_v42 = vmul.f32 %v5668_v36, %v6301_v29 }
 0x1c2   : > { %v509_v43 = vadd.f32 %v4590_v26, %v494_v37  ;;  %v481_v44 = vmul.f32 %v5670_v40, %v6309_v38 }
 0x1c3   : > { %4924 = vmatmul.mubr.msk.f32.vlgmr.msra.gmra.mrb[0].mxu0 %vm379_vm0, %v508_v41  ;;  %v495_v45 = vmul.f32 %v4589_v22, %v480_v42 }
 0x1c4   : > { %v5672_v46 = vpop.eup %5671  ;;  %4926 = vmatprep.mubr.msk.f32.mxu0 %vm379_vm0, %v509_v43  ;;  %v496_v28 = vmul.f32 %v4589_v22, %v481_v44  ;;  %v656_v43 = vld [vmem:[#allocation8 + $0x8] sm:$0xff]  ;;  %v655_v44 = vld [vmem:[#allocation8] sm:$0xff] }
 0x1c5   : > { %v5674_v21 = vpop.eup %5673  ;;  %v510_v47 = vadd.f32 %v4590_v26, %v495_v45  ;;  %v482_v50 = vmul.f32 %v5672_v46, %v6311_v39 }
 0x1c6   : > { %v511_v51 = vadd.f32 %v4590_v26, %v496_v28  ;;  %v483_v52 = vmul.f32 %v5674_v21, %v6319_v48  ;;  %v4591_v48 = vld [vmem:[%s6911_s4] ss:$0 sm:$0xff] }
 0x1c7   : > { %4927 = vmatmul.mubr.msk.f32.gmra.mrb[2].mxu0 %vm379_vm0, %v510_v47  ;;  %v497_v29 = vmul.f32 %v4589_v22, %v482_v50 }
 0x1c8   : > { %v5676_v53 = vpop.eup %5675  ;;  %4929 = vmatprep.mubr.msk.f32.mxu0 %vm379_vm0, %v511_v51  ;;  %v498_v38 = vmul.f32 %v4589_v22, %v483_v52  ;;  %v672_v51 = vld [vmem:[#allocation8 + $0x88] sm:$0xff]  ;;  %v663_v52 = vld [vmem:[#allocation8 + $0x40] sm:$0xff] }
 0x1c9   : > { %v512_v54 = vadd.f32 %v4590_v26, %v497_v29  ;;  %v484_v55 = vmul.f32 %v5676_v53, %v6321_v49  ;;  %v664_v53 = vld [vmem:[#allocation8 + $0x48] sm:$0xff] }
 0x1ca   : > { %v513_v56 = vadd.f32 %v4590_v26, %v498_v38 }
 0x1cb   : > { %4930 = vmatmul.mubr.msk.f32.gmra.mrb[4].mxu0 %vm379_vm0, %v512_v54  ;;  %v499_v57 = vmul.f32 %v4589_v22, %v484_v55 }
 0x1cc   : > { %4932 = vmatprep.mubr.msk.f32.mxu0 %vm379_vm0, %v513_v56 }
 0x1cd   : > { %v514_v39 = vadd.f32 %v4590_v26, %v499_v57 }
 0x1cf   : > { %4933 = vmatmul.mubr.msk.f32.gmra.mrb[6].mxu0 %vm379_vm0, %v514_v39 }
 0x296   : > { %v4925_v58 = vpop.f32.mrb[0].mxu0 }
 0x297   : > { %v622_v59 = vadd.f32 %v4925_v58, %v4591_v48  ;;  %v616_v60 = vpop.f32.mrb[1].mxu0 }
 0x298   : > { %v617_v61 = vadd.f32 %v4591_v48, %v616_v60  ;;  %v680_v60 = vld [vmem:[#allocation8 + $0xc8] sm:$0xff] }
 0x299   : > { %v6388_v32 = vmul.f32 0.35355338, %v622_v59 }
 0x29a   : > { %v4928_v62 = vpop.f32.mrb[2].mxu0  ;;  %v6356_v49 = vpack.i.bf16 %v622_v59, %v617_v61  ;;  %v6358_v63 = vmul.f32 0.35355338, %v617_v61  ;;  %v671_v59 = vld [vmem:[#allocation8 + $0x80] sm:$0xff] }
 0x29b   : > { %v632_v0 = vadd.f32 %v4928_v62, %v4591_v48  ;;  %v626_v1 = vpop.f32.mrb[3].mxu0 }
 0x29c   : > { %v627_v2 = vadd.f32 %v4591_v48, %v626_v1  ;;  %5502 = vrot.lane.b32.xlu0 %v6356_v49, %s6001_s16  ;;  %4939 = vmatprep.mubr.msk.f32.mxu1 %vm701_vm1, %v6358_v63 }
 0x29d   : > { %v6404_v37 = vmul.f32 0.35355338, %v632_v0 }
 0x29e   : > { %v4931_v3 = vpop.f32.mrb[4].mxu0  ;;  %v6363_v4 = vpack.i.bf16 %v632_v0, %v627_v2  ;;  %v6390_v34 = vmul.f32 0.35355338, %v627_v2 }
 0x29f   : > { %v642_v5 = vadd.f32 %v4931_v3, %v4591_v48  ;;  %v636_v6 = vpop.f32.mrb[5].mxu0  ;;  %v679_v3 = vld [vmem:[#allocation8 + $0xc0] sm:$0xff] }
 0x2a0   : > { %v637_v7 = vadd.f32 %v4591_v48, %v636_v6  ;;  %5507 = vrot.lane.b32.xlu1 %v6363_v4, %s6001_s16 }
 0x2a1   : > { %v6406_v40 = vmul.f32 0.35355338, %v642_v5 }
 0x2a2   : > { %v4934_v8 = vpop.f32.mrb[6].mxu0  ;;  %v6366_v9 = vpack.i.bf16 %v642_v5, %v637_v7  ;;  %v6368_v10 = vmul.f32 0.35355338, %v637_v7 }
 0x2a3   : > { %v652_v11 = vadd.f32 %v4934_v8, %v4591_v48  ;;  %v646_v12 = vpop.f32.mrb[7].mxu0 }
 0x2a4   : > { %v647_v13 = vadd.f32 %v4591_v48, %v646_v12  ;;  %5512 = vrot.lane.b32.xlu1 %v6366_v9, %s6001_s16  ;;  %4953 = vmatprep.mubr.msk.f32.mxu0 %vm701_vm1, %v6368_v10 }
 0x2a5   : > { %v6418_v42 = vmul.f32 0.35355338, %v652_v11 }
 0x2a6   : > { %v6373_v14 = vpack.i.bf16 %v652_v11, %v647_v13  ;;  %v6410_v41 = vmul.f32 0.35355338, %v647_v13 }
 0x2a8   : > { %5517 = vrot.lane.b32.xlu1 %v6373_v14, %s6001_s16  ;;  %s368_s16 = scalar_lea.vmem [#allocation10], %s4584_s10  ;;  %s4738_s10 = sshll.u32 %s6081_s9, 10 }
 0x2a9   : > { %s4457_s9 = scalar_lea.sflag [#allocation4], %s6265_s12 }
 0x30e   : > { %v5503_v15 = vpop.permute.xlu0 %5502 }
 0x30f   : > { %v5505_v16 = vunpack.i.h.bf16 %v5503_v15  ;;  %v5504_v17 = vunpack.i.l.bf16 %v5503_v15 }
 0x311   : > { %v5223_v19 = vpack.c.bf16 %v5505_v16, %v5504_v17 }
 0x312   : > { %v5508_v22 = vpop.permute.xlu1 %5507 }
 0x313   : > { %v5510_v23 = vunpack.i.h.bf16 %v5508_v22  ;;  %v5509_v24 = vunpack.i.l.bf16 %v5508_v22  ;;  %5225 = vmatprep.subr.msk.bf16.mxu1 %vm6378_vm2, %v5223_v19 }
 0x314   : > { %5228 = vmatpush3.bf16.xpose.msk.msra.mxu1 %vm6378_vm2, %v5223_v19 }
 0x315   : > { %v5229_v25 = vpack.c.bf16 %v5510_v23, %v5509_v24 }
 0x316   : > { %v5513_v26 = vpop.permute.xlu1 %5512 }
 0x317   : > { %v5515_v27 = vunpack.i.h.bf16 %v5513_v26  ;;  %v5514_v30 = vunpack.i.l.bf16 %v5513_v26  ;;  %5231 = vmatprep.subr.msk.bf16.mxu1 %vm6378_vm2, %v5229_v25 }
 0x319   : > { %v5235_v31 = vpack.c.bf16 %v5515_v27, %v5514_v30 }
 0x31a   : > { %v5518_v33 = vpop.permute.xlu1 %5517 }
 0x31b   : > { %v5520_v35 = vunpack.i.h.bf16 %v5518_v33  ;;  %v5519_v20 = vunpack.i.l.bf16 %v5518_v33  ;;  %4940 = vmatmul.mubr.msk.f32.vlgmr.msra.gmra.mrb[0].mxu1 %vm701_vm1, %v6388_v32  ;;  %5237 = vmatprep.subr.msk.bf16.mxu0 %vm6378_vm2, %v5235_v31 }
 0x31c   : > { %5234 = vmatpush3.bf16.xpose.msk.msra.mxu1 %vm6378_vm2, %v5229_v25  ;;  %4946 = vmatprep.mubr.msk.f32.mxu1 %vm701_vm1, %v6390_v34 }
 0x31d   : > { %v5241_v36 = vpack.c.bf16 %v5520_v35, %v5519_v20  ;;  %5240 = vmatpush3.bf16.xpose.msk.msra.mxu0 %vm6378_vm2, %v5235_v31 }
 0x31f   : > { %5243 = vmatprep.subr.msk.bf16.mxu1 %vm6378_vm2, %v5241_v36 }
 0x323   : > { %4947 = vmatmul.mubr.msk.f32.vlgmr.msra.gmra.mrb[2].mxu1 %vm701_vm1, %v6404_v37 }
 0x324   : > { %4954 = vmatmul.mubr.msk.f32.vlgmr.msra.gmra.mrb[8].mxu0 %vm701_vm1, %v6406_v40  ;;  %5246 = vmatpush3.bf16.xpose.msk.msra.mxu1 %vm6378_vm2, %v5241_v36 }
 0x325   : > { %4960 = vmatprep.mubr.msk.f32.mxu1 %vm701_vm1, %v6410_v41 }
 0x32b   : > { %4961 = vmatmul.mubr.msk.f32.vlgmr.msra.gmra.mrb[4].mxu1 %vm701_vm1, %v6418_v42 }
 0x3ee   : > { %v4941_v45 = vpop.f32.mrb[0].mxu1 }
 0x3ef   : > { %v784_v46 = vadd.f32 %v4941_v45, %v656_v43  ;;  %v778_v28 = vpop.f32.mrb[1].mxu1 }
 0x3f0   : > { %v779_v21 = vadd.f32 %v778_v28, %v655_v44 }
 0x3f1   : > { %v1064_v47 = vsel %vm1060_vm3, %v784_v46, -inf }
 0x3f2   : > { %1065 = vmax.xlane.f32.xlu1 %v1064_v47  ;;  %v1061_v50 = vsel %vm1060_vm3, %v779_v21, -inf }
 0x3f3   : > { %1062 = vmax.xlane.f32.xlu0 %v1061_v50 }
 0x3f6   : > { %v4948_v29 = vpop.f32.mrb[2].mxu1 }
 0x3f7   : > { %v4955_v38 = vpop.f32.mrb[8].mxu0  ;;  %v869_v54 = vpop.f32.mrb[3].mxu1  ;;  %v875_v39 = vadd.f32 %v4948_v29, %v664_v53 }
 0x3f8   : > { %v966_v55 = vadd.f32 %v4955_v38, %v672_v51  ;;  %v870_v56 = vadd.f32 %v869_v54, %v663_v52  ;;  %v960_v57 = vpop.f32.mrb[9].mxu0 }
 0x3f9   : > { %v961_v61 = vadd.f32 %v960_v57, %v671_v59  ;;  %v1070_v0 = vsel %vm1060_vm3, %v875_v39, -inf }
 0x3fa   : > { %v1076_v48 = vsel %vm1060_vm3, %v966_v55, -inf  ;;  %v1067_v58 = vsel %vm1060_vm3, %v870_v56, -inf }
 0x3fb   : > { %1077 = vmax.xlane.f32.xlu1 %v1076_v48  ;;  %1068 = vmax.xlane.f32.xlu0 %v1067_v58  ;;  %v1073_v7 = vsel %vm1060_vm3, %v961_v61, -inf }
 0x3fe   : > { %v4962_v62 = vpop.f32.mrb[4].mxu1 }
 0x3ff   : > { %v1057_v1 = vadd.f32 %v4962_v62, %v680_v60  ;;  %v1051_v2 = vpop.f32.mrb[5].mxu1  ;;  %1071 = vmax.xlane.f32.xlu0 %v1070_v0 }
 0x400   : > { %v1052_v6 = vadd.f32 %v1051_v2, %v679_v3 }
 0x401   : > { %v1082_v5 = vsel %vm1060_vm3, %v1057_v1, -inf }
 0x402   : > { %1083 = vmax.xlane.f32.xlu1 %v1082_v5  ;;  %v1079_v8 = vsel %vm1060_vm3, %v1052_v6, -inf }
 0x403   : > { %1074 = vmax.xlane.f32.xlu0 %v1073_v7 }
 0x407   : > { %1080 = vmax.xlane.f32.xlu0 %v1079_v8 }
 0x413   : > { %5527 = vrot.lane.b32.xlu1 %v6363_v4, %s6002_s24 }
 0x417   : > { %5532 = vrot.lane.b32.xlu1 %v6366_v9, %s6002_s24 }
 0x41b   : > { %5537 = vrot.lane.b32.xlu1 %v6373_v14, %s6002_s24 }
 0x41d   : > { %5522 = vrot.lane.b32.xlu0 %v6356_v49, %s6002_s24  ;;  %s4471_s24 = sshll.u32 %s368_s16, 4  ;;  %s6861_s24 = int_to_ptr.vmem [resolvable:$true] %s4471_s24 }
 0x41f   : > { %5547 = vrot.lane.b32.xlu1 %v6363_v4, %s6003_s25 }
 0x421   : > { %5542 = vrot.lane.b32.xlu0 %v6356_v49, %s6003_s25 }
 0x423   : > { %1498 = vrot.lane.b32.xlu1 %v6358_v63, %s6004_s20 }
 0x425   : > { %5552 = vrot.lane.b32.xlu0 %v6366_v9, %s6003_s25 }
 0x47f   : > { %v1066_v11 = vpop.xlane.xlu1 %1065 }
 0x480   : > { %v1086_v12 = vsub.f32 %v784_v46, %v1066_v11  ;;  %v1063_v13 = vpop.xlane.xlu0 %1062 }
 0x481   : > { %v1085_v15 = vsub.f32 %v779_v21, %v1063_v13 }
 0x482   : > { %v1095_v16 = vmul.f32 1.442695, %v1086_v12 }
 0x483   : > { %v1093_v17 = vmul.f32 1.442695, %v1085_v15 }
 0x484   : > { %5677 = vpow2.f32 %v1095_v16 }
 0x485   : > { %5679 = vpow2.f32 %v1093_v17 }
 0x488   : > { %v1078_v19 = vpop.xlane.xlu1 %1077  ;;  %v1069_v22 = vpop.xlane.xlu0 %1068 }
 0x489   : > { %v1087_v23 = vsub.f32 %v870_v56, %v1069_v22  ;;  %v1090_v24 = vsub.f32 %v966_v55, %v1078_v19 }
 0x48b   : > { %v1097_v25 = vmul.f32 1.442695, %v1087_v23  ;;  %v1103_v33 = vmul.f32 1.442695, %v1090_v24 }
 0x48c   : > { %v1072_v26 = vpop.xlane.xlu0 %1071 }
 0x48d   : > { %v1088_v27 = vsub.f32 %v875_v39, %v1072_v26  ;;  %5681 = vpow2.f32 %v1097_v25 }
 0x48e   : > { %v6442_v30 = vpop.eup %5677 }
 0x48f   : > { %v6444_v31 = vpop.eup %5679  ;;  %v1099_v35 = vmul.f32 1.442695, %v1088_v27  ;;  %v1084_v20 = vpop.xlane.xlu1 %1083  ;;  %v1112_v36 = vsel %vm1060_vm3, %v6442_v30, 0.0 }
 0x490   : > { %v1092_v43 = vsub.f32 %v1057_v1, %v1084_v20  ;;  %1113 = vadd.xlane.f32.xlu1 %v1112_v36  ;;  %v1075_v44 = vpop.xlane.xlu0 %1074  ;;  %v1109_v45 = vsel %vm1060_vm3, %v6444_v31, 0.0 }
 0x491   : > { %5683 = vpow2.f32 %v1099_v35  ;;  %v1089_v46 = vsub.f32 %v961_v61, %v1075_v44  ;;  %1110 = vadd.xlane.f32.xlu0 %v1109_v45 }
 0x492   : > { %5685 = vpow2.f32 %v1103_v33  ;;  %v1107_v28 = vmul.f32 1.442695, %v1092_v43 }
 0x493   : > { %v1101_v21 = vmul.f32 1.442695, %v1089_v46  ;;  %v5528_v47 = vpop.permute.xlu1 %5527 }
 0x494   : > { %v5530_v50 = vunpack.i.h.bf16 %v5528_v47  ;;  %v5529_v51 = vunpack.i.l.bf16 %v5528_v47  ;;  %v1081_v52 = vpop.xlane.xlu0 %1080 }
 0x495   : > { %5687 = vpow2.f32 %v1101_v21  ;;  %v1091_v29 = vsub.f32 %v1052_v6, %v1081_v52 }
 0x496   : > { %v5251_v53 = vpack.c.bf16 %v5530_v50, %v5529_v51  ;;  %5689 = vpow2.f32 %v1107_v28 }
 0x497   : > { %v1105_v38 = vmul.f32 1.442695, %v1091_v29  ;;  %v5533_v54 = vpop.permute.xlu1 %5532  ;;  %v6450_v55 = vpop.eup %5681 }
 0x498   : > { %v5535_v56 = vunpack.i.h.bf16 %v5533_v54  ;;  %v5534_v57 = vunpack.i.l.bf16 %v5533_v54  ;;  %5252 = vmatprep.subr.bf16.mxu1 %v5251_v53  ;;  %v5523_v39 = vpop.permute.xlu0 %5522  ;;  %v1115_v59 = vsel %vm1060_vm3, %v6450_v55, 0.0 }
 0x499   : > { %5691 = vpow2.f32 %v1105_v38  ;;  %v5525_v48 = vunpack.i.h.bf16 %v5523_v39  ;;  %v5524_v58 = vunpack.i.l.bf16 %v5523_v39  ;;  %5254 = vmatpush3.bf16.msra.mxu1 %v5251_v53  ;;  %1116 = vadd.xlane.f32.xlu0 %v1115_v59 }
 0x49a   : > { %v5255_v5 = vpack.c.bf16 %v5535_v56, %v5534_v57 }
 0x49b   : > { %v6454_v60 = vpop.eup %5683  ;;  %v5538_v61 = vpop.permute.xlu1 %5537  ;;  %v5247_v62 = vpack.c.bf16 %v5525_v48, %v5524_v58 }
 0x49c   : > { %v5540_v0 = vunpack.i.h.bf16 %v5538_v61  ;;  %v5539_v1 = vunpack.i.l.bf16 %v5538_v61  ;;  %v1118_v2 = vsel %vm1060_vm3, %v6454_v60, 0.0  ;;  %v6458_v3 = vpop.eup %5685  ;;  %v5543_v19 = vpop.permute.xlu0 %5542 }
 0x49d   : > { %1119 = vadd.xlane.f32.xlu1 %v1118_v2  ;;  %5248 = vmatprep.subr.bf16.mxu0 %v5247_v62  ;;  %v1124_v8 = vsel %vm1060_vm3, %v6458_v3, 0.0  ;;  %v5545_v35 = vunpack.i.h.bf16 %v5543_v19  ;;  %v5544_v20 = vunpack.i.l.bf16 %v5543_v19 }
 0x49e   : > { %5250 = vmatpush3.bf16.msra.mxu0 %v5247_v62  ;;  %v6460_v6 = vpack.c.bf16 %v5540_v0, %v5539_v1 }
 0x49f   : > { %v6462_v7 = vpop.eup %5687  ;;  %5256 = vmatprep.subr.bf16.mxu0 %v5255_v5  ;;  %v5548_v17 = vpop.permute.xlu1 %5547  ;;  %v5263_v45 = vpack.c.bf16 %v5545_v35, %v5544_v20  ;;  %v665_v20 = vld [vmem:[#allocation8 + $0x50] sm:$0xff] }
 0x4a0   : > { %5260 = vmatprep.subr.bf16.mxu1 %v6460_v6  ;;  %v1121_v11 = vsel %vm1060_vm3, %v6462_v7, 0.0  ;;  %v6469_v12 = vpop.eup %5689  ;;  %v5553_v23 = vpop.permute.xlu0 %5552  ;;  %v5549_v51 = vunpack.i.l.bf16 %v5548_v17 }
 0x4a1   : > { %1125 = vadd.xlane.f32.xlu1 %v1124_v8  ;;  %1122 = vadd.xlane.f32.xlu0 %v1121_v11  ;;  %v1130_v15 = vsel %vm1060_vm3, %v6469_v12, 0.0  ;;  %v5555_v57 = vunpack.i.h.bf16 %v5553_v23  ;;  %v5554_v39 = vunpack.i.l.bf16 %v5553_v23 }
 0x4a3   : > { %v6471_v13 = vpop.eup %5691  ;;  %v1499_v22 = vpop.permute.xlu1 %1498  ;;  %v5275_v61 = vpack.c.bf16 %v5555_v57, %v5554_v39 }
 0x4a4   : > { %v1127_v16 = vsel %vm1060_vm3, %v6471_v13, 0.0 }
 0x4a5   : > { %1131 = vadd.xlane.f32.xlu1 %v1130_v15  ;;  %1128 = vadd.xlane.f32.xlu0 %v1127_v16 }
 0x4b6   : > { %5557 = vrot.lane.b32.xlu1 %v6373_v14, %s6003_s25 }
 0x4ba   : > { %1591 = vrot.lane.b32.xlu1 %v6404_v37, %s6004_s20 }
 0x4bb   : > { %1500 = vrot.lane.b32.xlu0 %v6388_v32, %s6004_s20 }
 0x4be   : > { %1682 = vrot.lane.b32.xlu1 %v6406_v40, %s6004_s20 }
 0x4bf   : > { %1589 = vrot.lane.b32.xlu0 %v6390_v34, %s6004_s20 }
 0x4c2   : > { %1773 = vrot.lane.b32.xlu1 %v6418_v42, %s6004_s20 }
 0x4c3   : > { %1680 = vrot.lane.b32.xlu0 %v6368_v10, %s6004_s20 }
 0x4c7   : > { %1771 = vrot.lane.b32.xlu0 %v6410_v41, %s6004_s20 }
 0x51d   : > { %v1114_v24 = vpop.xlane.xlu1 %1113 }
 0x51e   : > { %5693 = vrcp.f32 %v1114_v24  ;;  %v1111_v25 = vpop.xlane.xlu0 %1110 }
 0x51f   : > { %5695 = vrcp.f32 %v1111_v25  ;;  %v657_v25 = vld [vmem:[#allocation8 + $0x10] sm:$0xff] }
 0x526   : > { %v1117_v26 = vpop.xlane.xlu0 %1116 }
 0x527   : > { %5697 = vrcp.f32 %v1117_v26 }
 0x528   : > { %v5694_v27 = vpop.eup %5693 }
 0x529   : > { %v5696_v33 = vpop.eup %5695  ;;  %v1142_v44 = vmul.f32 %v5694_v27, %v6442_v30  ;;  %v5550_v30 = vunpack.i.h.bf16 %v5548_v17  ;;  %v658_v27 = vld [vmem:[#allocation8 + $0x18] sm:$0xff] }
 0x52a   : > { %v1120_v36 = vpop.xlane.xlu1 %1119  ;;  %v1141_v43 = vmul.f32 %v5696_v33, %v6444_v31 }
 0x52b   : > { %5699 = vrcp.f32 %v1120_v36  ;;  %v5269_v53 = vpack.c.bf16 %v5550_v30, %v5549_v51 }
 0x52c   : > { %4967 = vmatprep.mubr.msk.f32.mxu0 %vm1060_vm3, %v1141_v43 }
 0x52d   : > { %4968 = vmatmul.mubr.msk.f32.vlgmr.msra.gmra.mrb[10].mxu0 %vm1060_vm3, %v1142_v44 }
 0x52e   : > { %5258 = vmatpush3.bf16.msra.mxu0 %v5255_v5  ;;  %v1126_v46 = vpop.xlane.xlu1 %1125  ;;  %v1123_v28 = vpop.xlane.xlu0 %1122 }
 0x52f   : > { %5701 = vrcp.f32 %v1126_v46  ;;  %5265 = vmatprep.subr.msk.bf16.mxu0 %vm6378_vm2, %v5263_v45 }
 0x530   : > { %5703 = vrcp.f32 %v1123_v28 }
 0x531   : > { %v5698_v21 = vpop.eup %5697 }
 0x532   : > { %v1132_v47 = vpop.xlane.xlu1 %1131  ;;  %v1129_v50 = vpop.xlane.xlu0 %1128  ;;  %v1143_v31 = vmul.f32 %v5698_v21, %v6450_v55  ;;  %v674_v21 = vld [vmem:[#allocation8 + $0x98] sm:$0xff] }
 0x533   : > { %5705 = vrcp.f32 %v1132_v47 }
 0x534   : > { %5707 = vrcp.f32 %v1129_v50  ;;  %4974 = vmatprep.mubr.msk.f32.mxu1 %vm1060_vm3, %v1143_v31 }
 0x535   : > { %v5700_v52 = vpop.eup %5699 }
 0x536   : > { %v1144_v29 = vmul.f32 %v5700_v52, %v6454_v60  ;;  %v1501_v38 = vpop.permute.xlu0 %1500  ;;  %v5558_v48 = vpop.permute.xlu1 %5557 }
 0x537   : > { %v5560_v0 = vunpack.i.h.bf16 %v5558_v48  ;;  %v5559_v1 = vunpack.i.l.bf16 %v5558_v48  ;;  %v681_v48 = vld [vmem:[#allocation8 + $0xd0] sm:$0xff] }
 0x538   : > { %4975 = vmatmul.mubr.msk.f32.vlgmr.msra.gmra.mrb[6].mxu1 %vm1060_vm3, %v1144_v29  ;;  %v673_v29 = vld [vmem:[#allocation8 + $0x90] sm:$0xff] }
 0x539   : > { %v5702_v54 = vpop.eup %5701  ;;  %5262 = vmatpush3.bf16.msra.mxu1 %v6460_v6  ;;  %v5281_v5 = vpack.c.bf16 %v5560_v0, %v5559_v1 }
 0x53a   : > { %v5704_v56 = vpop.eup %5703  ;;  %v1146_v55 = vmul.f32 %v5702_v54, %v6458_v3  ;;  %5271 = vmatprep.subr.msk.bf16.mxu1 %vm6378_vm2, %v5269_v53  ;;  %v1590_v2 = vpop.permute.xlu0 %1589 }
 0x53b   : > { %v1145_v58 = vmul.f32 %v5704_v56, %v6462_v7  ;;  %v1592_v7 = vpop.permute.xlu1 %1591 }
 0x53d   : > { %v5706_v59 = vpop.eup %5705  ;;  %4981 = vmatprep.mubr.msk.f32.mxu0 %vm1060_vm3, %v1145_v58 }
 0x53e   : > { %v5708_v60 = vpop.eup %5707  ;;  %v1148_v62 = vmul.f32 %v5706_v59, %v6469_v12  ;;  %4982 = vmatmul.mubr.msk.f32.vlgmr.msra.gmra.mrb[12].mxu0 %vm1060_vm3, %v1146_v55  ;;  %v1681_v6 = vpop.permute.xlu0 %1680 }
 0x53f   : > { %5268 = vmatpush3.bf16.xpose.msk.msra.mxu0 %vm6378_vm2, %v5263_v45  ;;  %4995 = vmatprep.mubr.msk.f32.mxu0 %vm701_vm1, %v1499_v22  ;;  %v1147_v3 = vmul.f32 %v5708_v60, %v6471_v13  ;;  %v1683_v11 = vpop.permute.xlu1 %1682  ;;  %v666_v45 = vld [vmem:[#allocation8 + $0x58] sm:$0xff] }
 0x540   : > { %5277 = vmatprep.subr.msk.bf16.mxu0 %vm6378_vm2, %v5275_v61 }
 0x541   : > { %4988 = vmatprep.mubr.msk.f32.mxu1 %vm1060_vm3, %v1147_v3 }
 0x542   : > { %4989 = vmatmul.mubr.msk.f32.vlgmr.msra.gmra.mrb[8].mxu1 %vm1060_vm3, %v1148_v62  ;;  %v1772_v8 = vpop.permute.xlu0 %1771 }
 0x543   : > { %5274 = vmatpush3.bf16.xpose.msk.msra.mxu1 %vm6378_vm2, %v5269_v53  ;;  %5002 = vmatprep.mubr.msk.f32.mxu1 %vm701_vm1, %v1590_v2  ;;  %v1774_v12 = vpop.permute.xlu1 %1773  ;;  %v682_v53 = vld [vmem:[#allocation8 + $0xd8] sm:$0xff] }
 0x544   : > { %5283 = vmatprep.subr.msk.bf16.mxu1 %vm6378_vm2, %v5281_v5 }
 0x546   : > { %4996 = vmatmul.mubr.msk.f32.vlgmr.msra.gmra.mrb[14].mxu0 %vm701_vm1, %v1501_v38 }
 0x547   : > { %5280 = vmatpush3.bf16.xpose.msk.msra.mxu0 %vm6378_vm2, %v5275_v61  ;;  %5009 = vmatprep.mubr.msk.f32.mxu0 %vm701_vm1, %v1681_v6 }
 0x54a   : > { %5003 = vmatmul.mubr.msk.f32.vlgmr.msra.gmra.mrb[10].mxu1 %vm701_vm1, %v1592_v7 }
 0x54b   : > { %5286 = vmatpush3.bf16.xpose.msk.msra.mxu1 %vm6378_vm2, %v5281_v5  ;;  %5016 = vmatprep.mubr.msk.f32.mxu1 %vm701_vm1, %v1772_v8 }
 0x54e   : > { %5010 = vmatmul.mubr.msk.f32.vlgmr.msra.gmra.mrb[16].mxu0 %vm701_vm1, %v1683_v11 }
 0x552   : > { %5017 = vmatmul.mubr.msk.f32.vlgmr.msra.gmra.mrb[12].mxu1 %vm701_vm1, %v1774_v12 }
 0x600   : > { %v6534_v13 = vpop.f32.mrb[10].mxu0 }
 0x601   : > { %v6536_v15 = vpop.f32.mrb[11].mxu0 }
 0x60b   : > { %v6538_v16 = vpop.f32.mrb[6].mxu1 }
 0x60c   : > { %v6540_v17 = vpop.f32.mrb[7].mxu1 }
 0x611   : > { %v6542_v19 = vpop.f32.mrb[12].mxu0 }
 0x612   : > { %v6544_v22 = vpop.f32.mrb[13].mxu0 }
 0x615   : > { %v6546_v23 = vpop.f32.mrb[8].mxu1 }
 0x616   : > { %v6548_v24 = vpop.f32.mrb[9].mxu1 }
 0x619   : > { %v4997_v26 = vpop.f32.mrb[14].mxu0 }
 0x61a   : > { %v1580_v33 = vpop.f32.mrb[15].mxu0  ;;  %v1586_v36 = vadd.f32 %v4997_v26, %v658_v27 }
 0x61b   : > { %v1581_v35 = vadd.f32 %v1580_v33, %v657_v25 }
 0x61c   : > { %v1865_v30 = vsel %vm1060_vm3, %v1586_v36, -inf }
 0x61d   : > { %v5004_v43 = vpop.f32.mrb[10].mxu1  ;;  %v1862_v44 = vsel %vm1060_vm3, %v1581_v35, -inf }
 0x61e   : > { %v1671_v46 = vpop.f32.mrb[11].mxu1  ;;  %1863 = vmax.xlane.f32.xlu0 %v1862_v44  ;;  %v1677_v47 = vadd.f32 %v5004_v43, %v666_v45 }
 0x61f   : > { %v1672_v28 = vadd.f32 %v1671_v46, %v665_v20 }
 0x620   : > { %v1871_v57 = vsel %vm1060_vm3, %v1677_v47, -inf }
 0x621   : > { %v5011_v50 = vpop.f32.mrb[16].mxu0  ;;  %v1868_v31 = vsel %vm1060_vm3, %v1672_v28, -inf }
 0x622   : > { %v1768_v51 = vadd.f32 %v5011_v50, %v674_v21  ;;  %1869 = vmax.xlane.f32.xlu1 %v1868_v31  ;;  %v1762_v52 = vpop.f32.mrb[17].mxu0  ;;  %1866 = vmax.xlane.f32.xlu0 %v1865_v30 }
 0x623   : > { %v1763_v54 = vadd.f32 %v1762_v52, %v673_v29 }
 0x624   : > { %v1877_v38 = vsel %vm1060_vm3, %v1768_v51, -inf }
 0x625   : > { %v5018_v56 = vpop.f32.mrb[12].mxu1  ;;  %v1874_v60 = vsel %vm1060_vm3, %v1763_v54, -inf }
 0x626   : > { %v1859_v39 = vadd.f32 %v5018_v56, %v682_v53  ;;  %v1853_v55 = vpop.f32.mrb[13].mxu1  ;;  %1878 = vmax.xlane.f32.xlu1 %v1877_v38  ;;  %1872 = vmax.xlane.f32.xlu0 %v1871_v57 }
 0x627   : > { %v1854_v59 = vadd.f32 %v1853_v55, %v681_v48 }
 0x628   : > { %v1883_v58 = vsel %vm1060_vm3, %v1859_v39, -inf }
 0x629   : > { %v1880_v61 = vsel %vm1060_vm3, %v1854_v59, -inf }
 0x62a   : > { %1884 = vmax.xlane.f32.xlu1 %v1883_v58  ;;  %1875 = vmax.xlane.f32.xlu0 %v1874_v60 }
 0x62e   : > { %1881 = vmax.xlane.f32.xlu0 %v1880_v61 }
 0x6ab   : > { %v1864_v62 = vpop.xlane.xlu0 %1863 }
 0x6ac   : > { %v1886_v0 = vsub.f32 %v1581_v35, %v1864_v62 }
 0x6ae   : > { %v1894_v6 = vmul.f32 1.442695, %v1886_v0 }
 0x6af   : > { %v1870_v1 = vpop.xlane.xlu1 %1869  ;;  %v1867_v2 = vpop.xlane.xlu0 %1866 }
 0x6b0   : > { %v1887_v3 = vsub.f32 %v1586_v36, %v1867_v2  ;;  %v1888_v26 = vsub.f32 %v1672_v28, %v1870_v1 }
 0x6b2   : > { %v1896_v5 = vmul.f32 1.442695, %v1887_v3  ;;  %v1898_v35 = vmul.f32 1.442695, %v1888_v26 }
 0x6b3   : > { %v1879_v7 = vpop.xlane.xlu1 %1878  ;;  %v1873_v8 = vpop.xlane.xlu0 %1872 }
 0x6b4   : > { %v1891_v11 = vsub.f32 %v1768_v51, %v1879_v7  ;;  %v1889_v12 = vsub.f32 %v1677_v47, %v1873_v8  ;;  %5709 = vpow2.f32 %v1896_v5 }
 0x6b5   : > { %5711 = vpow2.f32 %v1894_v6 }
 0x6b6   : > { %v1900_v25 = vmul.f32 1.442695, %v1889_v12  ;;  %v1904_v27 = vmul.f32 1.442695, %v1891_v11 }
 0x6b7   : > { %v1876_v33 = vpop.xlane.xlu0 %1875  ;;  %v1885_v20 = vpop.xlane.xlu1 %1884 }
 0x6b8   : > { %v1890_v43 = vsub.f32 %v1763_v54, %v1876_v33  ;;  %5713 = vpow2.f32 %v1900_v25  ;;  %v1893_v45 = vsub.f32 %v1859_v39, %v1885_v20 }
 0x6b9   : > { %5715 = vpow2.f32 %v1904_v27 }
 0x6ba   : > { %v1902_v44 = vmul.f32 1.442695, %v1890_v43  ;;  %v1908_v47 = vmul.f32 1.442695, %v1893_v45 }
 0x6bb   : > { %v1882_v36 = vpop.xlane.xlu0 %1881 }
 0x6bc   : > { %v1892_v46 = vsub.f32 %v1854_v59, %v1882_v36  ;;  %5717 = vpow2.f32 %v1902_v44 }
 0x6bd   : > { %5719 = vpow2.f32 %v1898_v35 }
 0x6be   : > { %v1906_v21 = vmul.f32 1.442695, %v1892_v46  ;;  %v6558_v50 = vpop.eup %5709 }
 0x6bf   : > { %v1913_v28 = vsel %vm1060_vm3, %v6558_v50, 0.0  ;;  %v5712_v31 = vpop.eup %5711 }
 0x6c0   : > { %5721 = vpow2.f32 %v1906_v21  ;;  %1914 = vadd.xlane.f32.xlu0 %v1913_v28  ;;  %v1910_v51 = vsel %vm1060_vm3, %v5712_v31, 0.0 }
 0x6c1   : > { %5723 = vpow2.f32 %v1908_v47 }
 0x6c2   : > { %v6562_v30 = vpop.eup %5713 }
 0x6c3   : > { %v1919_v52 = vsel %vm1060_vm3, %v6562_v30, 0.0  ;;  %v6567_v29 = vpop.eup %5715 }
 0x6c4   : > { %1911 = vadd.xlane.f32.xlu0 %v1910_v51  ;;  %1920 = vadd.xlane.f32.xlu1 %v1919_v52  ;;  %v1925_v38 = vsel %vm1060_vm3, %v6567_v29, 0.0 }
 0x6c6   : > { %v6569_v53 = vpop.eup %5717 }
 0x6c7   : > { %v1922_v54 = vsel %vm1060_vm3, %v6569_v53, 0.0  ;;  %v6575_v56 = vpop.eup %5719 }
 0x6c8   : > { %1926 = vadd.xlane.f32.xlu1 %v1925_v38  ;;  %1923 = vadd.xlane.f32.xlu0 %v1922_v54  ;;  %v1916_v55 = vsel %vm1060_vm3, %v6575_v56, 0.0 }
 0x6ca   : > { %v6577_v57 = vpop.eup %5721 }
 0x6cb   : > { %v1928_v39 = vsel %vm1060_vm3, %v6577_v57, 0.0  ;;  %v6583_v48 = vpop.eup %5723 }
 0x6cc   : > { %1917 = vadd.xlane.f32.xlu1 %v1916_v55  ;;  %1929 = vadd.xlane.f32.xlu0 %v1928_v39  ;;  %v1931_v58 = vsel %vm1060_vm3, %v6583_v48, 0.0 }
 0x6d0   : > { %1932 = vadd.xlane.f32.xlu1 %v1931_v58 }
 0x6e1   : > { %5567 = vrot.lane.b32.xlu1 %v6363_v4, %s6005_s14 }
 0x6e2   : > { %5562 = vrot.lane.b32.xlu0 %v6356_v49, %s6005_s14 }
 0x6e5   : > { %5572 = vrot.lane.b32.xlu1 %v6366_v9, %s6005_s14 }
 0x6e6   : > { %5582 = vrot.lane.b32.xlu0 %v6356_v49, %s6006_s15 }
 0x6e9   : > { %5577 = vrot.lane.b32.xlu1 %v6373_v14, %s6005_s14  ;;  %s6859_s14 = scalar_lea.hbm %s6915_s8, %s4738_s10 }
 0x6ea   : > { %2557 = vrot.lane.b32.xlu0 %v6358_v63, %s6007_s27 }
 0x6ed   : > { %5587 = vrot.lane.b32.xlu1 %v6363_v4, %s6006_s15 }
 0x6ee   : > { %5592 = vrot.lane.b32.xlu0 %v6366_v9, %s6006_s15 }
 0x6f1   : > { %2559 = vrot.lane.b32.xlu1 %v6388_v32, %s6007_s27 }
 0x6f2   : > { %2650 = vrot.lane.b32.xlu0 %v6404_v37, %s6007_s27 }
 0x6f5   : > { %2648 = vrot.lane.b32.xlu1 %v6390_v34, %s6007_s27 }
 0x6f6   : > { %2739 = vrot.lane.b32.xlu0 %v6368_v10, %s6007_s27 }
 0x6f9   : > { %5597 = vrot.lane.b32.xlu1 %v6373_v14, %s6006_s15  ;;  %s5919_s15 = scalar_lea.vmem %s6861_s24, 1024 }
 0x6fa   : > { %2830 = vrot.lane.b32.xlu0 %v6410_v41, %s6007_s27  ;;  %p5920_p10 = scmp.ne.s32.totalorder %s6861_s24, %s5919_s15 }
 0x6fc   : > { %p5921_p3 = pnand %p5920_p10, %p6214_p5 }
 0x6fd   : > { %2741 = vrot.lane.b32.xlu1 %v6406_v40, %s6007_s27 }
 0x6fe   : > { %p5922_p7 = pneg %p5921_p3 }
 0x701   : > { %2832 = vrot.lane.b32.xlu1 %v6418_v42, %s6007_s27  ;;  %s6012_s27 = smov [#allocation10]  }
 0x74d   : > { %v1915_v59 = vpop.xlane.xlu0 %1914 }
 0x751   : > { %v1921_v60 = vpop.xlane.xlu1 %1920  ;;  %v1912_v61 = vpop.xlane.xlu0 %1911 }
 0x752   : > { %5725 = vrcp.f32 %v1912_v61 }
 0x753   : > { %5727 = vrcp.f32 %v1915_v59 }
 0x755   : > { %v1927_v62 = vpop.xlane.xlu1 %1926  ;;  %v1924_v0 = vpop.xlane.xlu0 %1923 }
 0x756   : > { %5729 = vrcp.f32 %v1924_v0 }
 0x759   : > { %v1918_v1 = vpop.xlane.xlu1 %1917  ;;  %v1930_v2 = vpop.xlane.xlu0 %1929 }
 0x75a   : > { %5731 = vrcp.f32 %v1918_v1 }
 0x75b   : > { %5733 = vrcp.f32 %v1921_v60 }
 0x75c   : > { %5735 = vrcp.f32 %v1930_v2  ;;  %v5726_v3 = vpop.eup %5725 }
 0x75d   : > { %v1933_v5 = vpop.xlane.xlu1 %1932  ;;  %v5563_v6 = vpop.permute.xlu0 %5562  ;;  %v1942_v11 = vmul.f32 %v5726_v3, %v5712_v31  ;;  %5737 = vrcp.f32 %v1927_v62 }
 0x75e   : > { %v5565_v7 = vunpack.i.h.bf16 %v5563_v6  ;;  %v5564_v8 = vunpack.i.l.bf16 %v5563_v6  ;;  %v5728_v25 = vpop.eup %5727  ;;  %5739 = vrcp.f32 %v1933_v5 }
 0x75f   : > { %5023 = vmatprep.mubr.msk.f32.mxu0 %vm1060_vm3, %v1942_v11  ;;  %v1943_v44 = vmul.f32 %v5728_v25, %v6558_v50 }
 0x760   : > { %v5287_v12 = vpack.c.bf16 %v5565_v7, %v5564_v8  ;;  %v5730_v20 = vpop.eup %5729 }
 0x761   : > { %v5568_v26 = vpop.permute.xlu1 %5567  ;;  %v1946_v31 = vmul.f32 %v5730_v20, %v6569_v53  ;;  %v5583_v55 = vpop.permute.xlu0 %5582  ;;  %v2298_v53 = vld [vmem:[#allocation7 + $0x8] sm:$0xff] }
 0x762   : > { %v5570_v27 = vunpack.i.h.bf16 %v5568_v26  ;;  %v5569_v33 = vunpack.i.l.bf16 %v5568_v26  ;;  %5288 = vmatprep.subr.bf16.mxu0 %v5287_v12  ;;  %v5585_v60 = vunpack.i.h.bf16 %v5583_v55  ;;  %v5584_v61 = vunpack.i.l.bf16 %v5583_v55 }
 0x763   : > { %5290 = vmatpush3.bf16.msra.mxu0 %v5287_v12 }
 0x764   : > { %v5732_v43 = vpop.eup %5731  ;;  %v5291_v35 = vpack.c.bf16 %v5570_v27, %v5569_v33  ;;  %v5303_v62 = vpack.c.bf16 %v5585_v60, %v5584_v61 }
 0x765   : > { %v5734_v45 = vpop.eup %5733  ;;  %v5573_v36 = vpop.permute.xlu1 %5572  ;;  %v1944_v46 = vmul.f32 %v5732_v43, %v6575_v56 }
 0x766   : > { %v5736_v21 = vpop.eup %5735  ;;  %v5575_v47 = vunpack.i.h.bf16 %v5573_v36  ;;  %v5574_v28 = vunpack.i.l.bf16 %v5573_v36  ;;  %5024 = vmatmul.mubr.msk.f32.vlgmr.msra.gmra.mrb[18].mxu0 %vm1060_vm3, %v1943_v44  ;;  %5292 = vmatprep.subr.bf16.mxu1 %v5291_v35  ;;  %v1945_v51 = vmul.f32 %v5734_v45, %v6562_v30  ;;  %v2558_v7 = vpop.permute.xlu0 %2557 }
 0x767   : > { %5294 = vmatpush3.bf16.msra.mxu1 %v5291_v35  ;;  %5030 = vmatprep.mubr.msk.f32.mxu1 %vm1060_vm3, %v1944_v46  ;;  %v5738_v50 = vpop.eup %5737  ;;  %v1948_v54 = vmul.f32 %v5736_v21, %v6577_v57 }
 0x768   : > { %v5295_v52 = vpack.c.bf16 %v5575_v47, %v5574_v28  ;;  %5037 = vmatprep.mubr.msk.f32.mxu0 %vm1060_vm3, %v1946_v31  ;;  %v1947_v58 = vmul.f32 %v5738_v50, %v6567_v29  ;;  %v5740_v59 = vpop.eup %5739  ;;  %v1497_v29 = vld [vmem:[#allocation7] sm:$0xff] }
 0x769   : > { %v5578_v38 = vpop.permute.xlu1 %5577  ;;  %v1949_v57 = vmul.f32 %v5740_v59, %v6583_v48 }
 0x76a   : > { %v5580_v56 = vunpack.i.h.bf16 %v5578_v38  ;;  %v5579_v39 = vunpack.i.l.bf16 %v5578_v38  ;;  %5031 = vmatmul.mubr.msk.f32.vlgmr.msra.gmra.mrb[14].mxu1 %vm1060_vm3, %v1945_v51  ;;  %5296 = vmatprep.subr.bf16.mxu0 %v5295_v52  ;;  %v660_v51 = vld [vmem:[#allocation8 + $0x28] sm:$0xff] }
 0x76b   : > { %5298 = vmatpush3.bf16.msra.mxu0 %v5295_v52  ;;  %5044 = vmatprep.mubr.msk.f32.mxu1 %vm1060_vm3, %v1948_v54  ;;  %v659_v52 = vld [vmem:[#allocation8 + $0x20] sm:$0xff] }
 0x76c   : > { %v5299_v30 = vpack.c.bf16 %v5580_v56, %v5579_v39  ;;  %5047 = vmatprep.subr.mxu0 %v2298_v53 }
 0x76d   : > { %v5588_v0 = vpop.permute.xlu1 %5587 }
 0x76e   : > { %5038 = vmatmul.mubr.msk.f32.vlgmr.msra.gmra.mrb[20].mxu0 %vm1060_vm3, %v1947_v58  ;;  %5300 = vmatprep.subr.bf16.mxu1 %v5299_v30  ;;  %v5590_v3 = vunpack.i.h.bf16 %v5588_v0  ;;  %v5589_v5 = vunpack.i.l.bf16 %v5588_v0  ;;  %v675_v0 = vld [vmem:[#allocation8 + $0xa0] sm:$0xff] }
 0x76f   : > { %5302 = vmatpush3.bf16.msra.mxu1 %v5299_v30  ;;  %5048 = vmatpush3.msra.mxu0 %v2298_v53  ;;  %v667_v30 = vld [vmem:[#allocation8 + $0x60] sm:$0xff] }
 0x770   : > { %5383 = vmatprep.subr.mxu1 %v2298_v53  ;;  %5061 = vmatprep.subr.mxu0 %v1497_v29  ;;  %v5309_v8 = vpack.c.bf16 %v5590_v3, %v5589_v5 }
 0x771   : > { %v2560_v11 = vpop.permute.xlu1 %2559 }
 0x772   : > { %5045 = vmatmul.mubr.msk.f32.vlgmr.msra.gmra.mrb[16].mxu1 %vm1060_vm3, %v1949_v57 }
 0x773   : > { %5384 = vmatpush3.msra.mxu1 %v2298_v53  ;;  %v668_v53 = vld [vmem:[#allocation8 + $0x68] sm:$0xff] }
 0x774   : > { %5305 = vmatprep.subr.msk.bf16.mxu1 %vm6378_vm2, %v5303_v62 }
 0x775   : > { %v2649_v33 = vpop.permute.xlu1 %2648 }
 0x839   : > { %v5025_v1 = vpop.f32.mrb[18].mxu0 }
 0x83a   : > { %v2028_v2 = vpop.f32.mrb[19].mxu0 }
 0x83b   : > { %5049 = vmatprep.mubr.msk.f32.mxu0 %vm701_vm1, %v2028_v2 }
 0x83c   : > { %5050 = vmatmul.mubr.msk.f32.vlgmr.msra.gmra.mrb[22].mxu0 %vm701_vm1, %v5025_v1 }
 0x83d   : > { %v5032_v48 = vpop.f32.mrb[14].mxu1  ;;  %5063 = vmatprep.mubr.msk.f32.mxu0 %vm701_vm1, %v6536_v15  ;;  %5062 = vmatpush3.msra.mxu0 %v1497_v29  ;;  %v5593_v15 = vpop.permute.xlu0 %5592 }
 0x83e   : > { %v2115_v6 = vpop.f32.mrb[15].mxu1  ;;  %v5595_v20 = vunpack.i.h.bf16 %v5593_v15  ;;  %v5594_v43 = vunpack.i.l.bf16 %v5593_v15 }
 0x83f   : > { %5052 = vmatprep.mubr.msk.f32.mxu1 %vm701_vm1, %v2115_v6 }
 0x840   : > { %5053 = vmatmul.mubr.msk.f32.vlgmr.msra.gmra.mrb[18].mxu1 %vm701_vm1, %v5032_v48 }
 0x841   : > { %5308 = vmatpush3.bf16.xpose.msk.msra.mxu1 %vm6378_vm2, %v5303_v62  ;;  %v5039_v12 = vpop.f32.mrb[20].mxu0  ;;  %v2651_v44 = vpop.permute.xlu0 %2650  ;;  %v676_v62 = vld [vmem:[#allocation8 + $0xa8] sm:$0xff] }
 0x842   : > { %5311 = vmatprep.subr.msk.bf16.mxu1 %vm6378_vm2, %v5309_v8  ;;  %v2202_v25 = vpop.f32.mrb[21].mxu0 }
 0x843   : > { %5055 = vmatprep.mubr.msk.f32.mxu1 %vm701_vm1, %v2202_v25 }
 0x844   : > { %5056 = vmatmul.mubr.msk.f32.gmra.mrb[20].mxu1 %vm701_vm1, %v5039_v12  ;;  %5064 = vmatmul.mubr.msk.f32.vlgmr.msra.gmra.mrb[22].mxu0 %vm701_vm1, %v6534_v13  ;;  %v5315_v13 = vpack.c.bf16 %v5595_v20, %v5594_v43 }
 0x845   : > { %v5046_v26 = vpop.f32.mrb[16].mxu1  ;;  %5066 = vmatprep.mubr.msk.f32.mxu0 %vm701_vm1, %v6540_v17  ;;  %v5598_v17 = vpop.permute.xlu1 %5597 }
 0x846   : > { %v2289_v27 = vpop.f32.mrb[17].mxu1 }
 0x847   : > { %5058 = vmatprep.mubr.msk.f32.mxu1 %vm701_vm1, %v2289_v27 }
 0x848   : > { %5059 = vmatmul.mubr.msk.f32.gmra.mrb[22].mxu1 %vm701_vm1, %v5046_v26  ;;  %5067 = vmatmul.mubr.msk.f32.gmra.mrb[24].mxu0 %vm701_vm1, %v6538_v16  ;;  %v5600_v16 = vunpack.i.h.bf16 %v5598_v17 }
 0x849   : > { %5069 = vmatprep.mubr.msk.f32.mxu0 %vm701_vm1, %v6544_v22  ;;  %5079 = vmatprep.mubr.msk.f32.mxu1 %vm701_vm1, %v2558_v7  ;;  %v5599_v22 = vunpack.i.l.bf16 %v5598_v17  ;;  %v684_v7 = vld [vmem:[#allocation8 + $0xe8] sm:$0xff] }
 0x84b   : > { %v5321_v35 = vpack.c.bf16 %v5600_v16, %v5599_v22 }
 0x84c   : > { %5070 = vmatmul.mubr.msk.f32.gmra.mrb[26].mxu0 %vm701_vm1, %v6542_v19  ;;  %5080 = vmatmul.mubr.msk.f32.vlgmr.msra.gmra.mrb[24].mxu1 %vm701_vm1, %v2560_v11  ;;  %v2740_v19 = vpop.permute.xlu0 %2739 }
 0x84d   : > { %5314 = vmatpush3.bf16.xpose.msk.msra.mxu1 %vm6378_vm2, %v5309_v8  ;;  %5072 = vmatprep.mubr.msk.f32.mxu0 %vm701_vm1, %v6548_v24  ;;  %v2742_v24 = vpop.permute.xlu1 %2741  ;;  %v683_v8 = vld [vmem:[#allocation8 + $0xe0] sm:$0xff] }
 0x84e   : > { %5086 = vmatprep.mubr.msk.f32.mxu1 %vm701_vm1, %v2649_v33  ;;  %5317 = vmatprep.subr.msk.bf16.mxu1 %vm6378_vm2, %v5315_v13 }
 0x850   : > { %5073 = vmatmul.mubr.msk.f32.gmra.mrb[28].mxu0 %vm701_vm1, %v6546_v23  ;;  %v2831_v45 = vpop.permute.xlu0 %2830 }
 0x851   : > { %v2833_v23 = vpop.permute.xlu1 %2832 }
 0x854   : > { %5087 = vmatmul.mubr.msk.f32.vlgmr.msra.gmra.mrb[26].mxu1 %vm701_vm1, %v2651_v44 }
 0x855   : > { %5320 = vmatpush3.bf16.xpose.msk.msra.mxu1 %vm6378_vm2, %v5315_v13  ;;  %5093 = vmatprep.mubr.msk.f32.mxu1 %vm701_vm1, %v2740_v19 }
 0x856   : > { %5323 = vmatprep.subr.msk.bf16.mxu1 %vm6378_vm2, %v5321_v35 }
 0x85c   : > { %5094 = vmatmul.mubr.msk.f32.vlgmr.msra.gmra.mrb[28].mxu1 %vm701_vm1, %v2742_v24 }
 0x85d   : > { %5326 = vmatpush3.bf16.xpose.msk.msra.mxu1 %vm6378_vm2, %v5321_v35  ;;  %5100 = vmatprep.mubr.msk.f32.mxu1 %vm701_vm1, %v2831_v45 }
 0x864   : > { %5101 = vmatmul.mubr.msk.f32.vlgmr.msra.gmra.mrb[30].mxu1 %vm701_vm1, %v2833_v23 }
 0x913   : > { %v6666_v36 = vpop.f32.mrb[18].mxu1 }
 0x914   : > { %v6668_v46 = vpop.f32.mrb[19].mxu1 }
 0x917   : > { %v6670_v21 = vpop.f32.mrb[20].mxu1 }
 0x918   : > { %v6672_v47 = vpop.f32.mrb[21].mxu1 }
 0x91b   : > { %v6674_v28 = vpop.f32.mrb[22].mxu1 }
 0x91c   : > { %v6676_v31 = vpop.f32.mrb[23].mxu1 }
 0x91f   : > { %v5081_v50 = vpop.f32.mrb[24].mxu1 }
 0x920   : > { %v2645_v38 = vadd.f32 %v5081_v50, %v660_v51  ;;  %v2639_v54 = vpop.f32.mrb[25].mxu1 }
 0x921   : > { %v2640_v56 = vadd.f32 %v2639_v54, %v659_v52 }
 0x922   : > { %v2924_v39 = vsel %vm1060_vm3, %v2645_v38, -inf }
 0x923   : > { %2925 = vmax.xlane.f32.xlu1 %v2924_v39  ;;  %v2921_v55 = vsel %vm1060_vm3, %v2640_v56, -inf }
 0x924   : > { %2922 = vmax.xlane.f32.xlu0 %v2921_v55 }
 0x927   : > { %v5088_v58 = vpop.f32.mrb[26].mxu1 }
 0x928   : > { %v2736_v59 = vadd.f32 %v5088_v58, %v668_v53  ;;  %v2730_v60 = vpop.f32.mrb[27].mxu1 }
 0x929   : > { %v2731_v61 = vadd.f32 %v2730_v60, %v667_v30 }
 0x92a   : > { %v2930_v57 = vsel %vm1060_vm3, %v2736_v59, -inf }
 0x92b   : > { %2931 = vmax.xlane.f32.xlu0 %v2930_v57  ;;  %v2927_v29 = vsel %vm1060_vm3, %v2731_v61, -inf }
 0x92f   : > { %v5095_v1 = vpop.f32.mrb[28].mxu1  ;;  %2928 = vmax.xlane.f32.xlu0 %v2927_v29 }
 0x930   : > { %v2827_v2 = vadd.f32 %v5095_v1, %v676_v62  ;;  %v2821_v3 = vpop.f32.mrb[29].mxu1 }
 0x931   : > { %v2822_v5 = vadd.f32 %v2821_v3, %v675_v0 }
 0x932   : > { %v2936_v48 = vsel %vm1060_vm3, %v2827_v2, -inf }
 0x933   : > { %2937 = vmax.xlane.f32.xlu1 %v2936_v48  ;;  %v2933_v6 = vsel %vm1060_vm3, %v2822_v5, -inf }
 0x934   : > { %2934 = vmax.xlane.f32.xlu0 %v2933_v6 }
 0x937   : > { %v5102_v11 = vpop.f32.mrb[30].mxu1 }
 0x938   : > { %v2918_v12 = vadd.f32 %v5102_v11, %v684_v7  ;;  %v2912_v25 = vpop.f32.mrb[31].mxu1 }
 0x939   : > { %v2913_v15 = vadd.f32 %v2912_v25, %v683_v8 }
 0x93a   : > { %v2942_v26 = vsel %vm1060_vm3, %v2918_v12, -inf }
 0x93b   : > { %2943 = vmax.xlane.f32.xlu1 %v2942_v26  ;;  %v2939_v27 = vsel %vm1060_vm3, %v2913_v15, -inf }
 0x93c   : > { %2940 = vmax.xlane.f32.xlu0 %v2939_v27 }
 0x9b0   : > { %v2926_v33 = vpop.xlane.xlu1 %2925 }
 0x9b1   : > { %v2946_v20 = vsub.f32 %v2645_v38, %v2926_v33  ;;  %v2923_v43 = vpop.xlane.xlu0 %2922 }
 0x9b2   : > { %v2945_v13 = vsub.f32 %v2640_v56, %v2923_v43 }
 0x9b3   : > { %v2955_v17 = vmul.f32 1.442695, %v2946_v20 }
 0x9b4   : > { %v2953_v44 = vmul.f32 1.442695, %v2945_v13 }
 0x9b5   : > { %5741 = vpow2.f32 %v2955_v17 }
 0x9b6   : > { %5743 = vpow2.f32 %v2953_v44 }
 0x9b8   : > { %v2932_v16 = vpop.xlane.xlu0 %2931 }
 0x9b9   : > { %v2948_v22 = vsub.f32 %v2736_v59, %v2932_v16 }
 0x9bb   : > { %v2959_v19 = vmul.f32 1.442695, %v2948_v22 }
 0x9bc   : > { %v2929_v35 = vpop.xlane.xlu0 %2928 }
 0x9bd   : > { %5745 = vpow2.f32 %v2959_v19  ;;  %v2947_v24 = vsub.f32 %v2731_v61, %v2929_v35 }
 0x9bf   : > { %v6686_v45 = vpop.eup %5741  ;;  %v2957_v23 = vmul.f32 1.442695, %v2947_v24 }
 0x9c0   : > { %v6688_v51 = vpop.eup %5743  ;;  %v2938_v52 = vpop.xlane.xlu1 %2937  ;;  %v2972_v50 = vsel %vm1060_vm3, %v6686_v45, 0.0 }
 0x9c1   : > { %5747 = vpow2.f32 %v2957_v23  ;;  %v2950_v38 = vsub.f32 %v2827_v2, %v2938_v52  ;;  %v2935_v54 = vpop.xlane.xlu0 %2934  ;;  %2973 = vadd.xlane.f32.xlu1 %v2972_v50  ;;  %v2969_v56 = vsel %vm1060_vm3, %v6688_v51, 0.0 }
 0x9c2   : > { %v2949_v39 = vsub.f32 %v2822_v5, %v2935_v54  ;;  %2970 = vadd.xlane.f32.xlu0 %v2969_v56 }
 0x9c3   : > { %v2963_v55 = vmul.f32 1.442695, %v2950_v38 }
 0x9c4   : > { %v2961_v53 = vmul.f32 1.442695, %v2949_v39 }
 0x9c5   : > { %5749 = vpow2.f32 %v2963_v55 }
 0x9c6   : > { %5751 = vpow2.f32 %v2961_v53 }
 0x9c7   : > { %v6694_v58 = vpop.eup %5745 }
 0x9c8   : > { %v2944_v30 = vpop.xlane.xlu1 %2943  ;;  %v2978_v59 = vsel %vm1060_vm3, %v6694_v58, 0.0 }
 0x9c9   : > { %v2952_v60 = vsub.f32 %v2918_v12, %v2944_v30  ;;  %2979 = vadd.xlane.f32.xlu1 %v2978_v59  ;;  %v2941_v61 = vpop.xlane.xlu0 %2940 }
 0x9ca   : > { %v2951_v57 = vsub.f32 %v2913_v15, %v2941_v61 }
 0x9cb   : > { %v5748_v62 = vpop.eup %5747  ;;  %v2967_v29 = vmul.f32 1.442695, %v2952_v60 }
 0x9cc   : > { %v2965_v0 = vmul.f32 1.442695, %v2951_v57  ;;  %v2975_v1 = vsel %vm1060_vm3, %v5748_v62, 0.0 }
 0x9cd   : > { %5753 = vpow2.f32 %v2967_v29  ;;  %2976 = vadd.xlane.f32.xlu0 %v2975_v1 }
 0x9ce   : > { %5755 = vpow2.f32 %v2965_v0 }
 0x9cf   : > { %v6699_v2 = vpop.eup %5749 }
 0x9d0   : > { %v6701_v3 = vpop.eup %5751  ;;  %v2984_v5 = vsel %vm1060_vm3, %v6699_v2, 0.0 }
 0x9d1   : > { %2985 = vadd.xlane.f32.xlu1 %v2984_v5  ;;  %v2981_v48 = vsel %vm1060_vm3, %v6701_v3, 0.0 }
 0x9d2   : > { %2982 = vadd.xlane.f32.xlu0 %v2981_v48 }
 0x9d7   : > { %v6707_v6 = vpop.eup %5753 }
 0x9d8   : > { %v6709_v7 = vpop.eup %5755  ;;  %v2990_v8 = vsel %vm1060_vm3, %v6707_v6, 0.0 }
 0x9d9   : > { %2991 = vadd.xlane.f32.xlu1 %v2990_v8  ;;  %v2987_v11 = vsel %vm1060_vm3, %v6709_v7, 0.0 }
 0x9da   : > { %2988 = vadd.xlane.f32.xlu0 %v2987_v11 }
 0x9ea   : > { %5607 = vrot.lane.b32.xlu1 %v6363_v4, %s6008_s11 }
 0x9ee   : > { %5612 = vrot.lane.b32.xlu1 %v6366_v9, %s6008_s11 }
 0x9f0   : > { %5602 = vrot.lane.b32.xlu0 %v6356_v49, %s6008_s11 }
 0x9f2   : > { %5617 = vrot.lane.b32.xlu1 %v6373_v14, %s6008_s11  ;;  %s5923_s11 = sshll.u32 %s6012_s27, 4  ;;  %s5924_s11 = int_to_ptr.vmem [resolvable:$false] %s5923_s11 }
 0x9f3   : > { %p5926_p12 = scmp.lt.s32.totalorder %s6861_s24, %s5924_s11 }
 0x9f4   : > { %5622 = vrot.lane.b32.xlu0 %v6356_v49, %s6009_s13 }
 0x9f6   : > { %5627 = vrot.lane.b32.xlu1 %v6363_v4, %s6009_s13 }
 0x9f8   : > { %3495 = vrot.lane.b32.xlu0 %v6358_v63, %s6010_s19 }
 0x9fa   : > { %3497 = vrot.lane.b32.xlu1 %v6388_v32, %s6010_s19 }
 0x9fc   : > { %5632 = vrot.lane.b32.xlu0 %v6366_v9, %s6009_s13 }
 0x9fe   : > { %5637 = vrot.lane.b32.xlu1 %v6373_v14, %s6009_s13  ;;  %s5925_s13 = scalar_lea.vmem %s5924_s11, 2048 }
 0x9ff   : > { %p5927_p1 = scmp.lt.s32.totalorder %s5925_s13, %s5919_s15 }
 0xa00   : > { %3586 = vrot.lane.b32.xlu0 %v6390_v34, %s6010_s19 }
 0xa01   : > { %p5928_p2 = por %p5927_p1, %p5926_p12 }
 0xa02   : > { %3588 = vrot.lane.b32.xlu1 %v6404_v37, %s6010_s19 }
 0xa03   : > { %p5929_p4 = pnand %p5928_p2, %p5922_p7 }
 0xa04   : > { %3677 = vrot.lane.b32.xlu0 %v6368_v10, %s6010_s19 }
 0xa06   : > { %3679 = vrot.lane.b32.xlu1 %v6406_v40, %s6010_s19 }
 0xa08   : > { %3768 = vrot.lane.b32.xlu0 %v6410_v41, %s6010_s19 }
 0xa0a   : > { %3770 = vrot.lane.b32.xlu1 %v6418_v42, %s6010_s19 }
 0xa4e   : > { %v2974_v32 = vpop.xlane.xlu1 %2973 }
 0xa4f   : > { %v2971_v12 = vpop.xlane.xlu0 %2970 }
 0xa50   : > { %5757 = vrcp.f32 %v2971_v12 }
 0xa56   : > { %v2980_v34 = vpop.xlane.xlu1 %2979 }
 0xa5a   : > { %v5758_v63 = vpop.eup %5757  ;;  %v2977_v25 = vpop.xlane.xlu0 %2976 }
 0xa5b   : > { %5759 = vrcp.f32 %v2977_v25  ;;  %v3001_v15 = vmul.f32 %v5758_v63, %v6688_v51 }
 0xa5c   : > { %5761 = vrcp.f32 %v2974_v32 }
 0xa5d   : > { %5107 = vmatprep.mubr.msk.f32.mxu0 %vm1060_vm3, %v3001_v15  ;;  %5763 = vrcp.f32 %v2980_v34 }
 0xa5e   : > { %v2986_v37 = vpop.xlane.xlu1 %2985 }
 0xa5f   : > { %v2983_v26 = vpop.xlane.xlu0 %2982 }
 0xa60   : > { %5765 = vrcp.f32 %v2983_v26 }
 0xa65   : > { %v5760_v10 = vpop.eup %5759 }
 0xa66   : > { %v2992_v40 = vpop.xlane.xlu1 %2991  ;;  %v3003_v41 = vmul.f32 %v5760_v10, %v5748_v62  ;;  %v5762_v44 = vpop.eup %5761 }
 0xa67   : > { %v2989_v42 = vpop.xlane.xlu0 %2988  ;;  %v5764_v22 = vpop.eup %5763  ;;  %v3002_v56 = vmul.f32 %v5762_v44, %v6686_v45 }
 0xa68   : > { %5767 = vrcp.f32 %v2989_v42  ;;  %5114 = vmatprep.mubr.msk.f32.mxu1 %vm1060_vm3, %v3003_v41  ;;  %v3004_v50 = vmul.f32 %v5764_v22, %v6694_v58  ;;  %v3357_v58 = vld [vmem:[#allocation7 + $0x10] sm:$0xff] }
 0xa69   : > { %5769 = vrcp.f32 %v2986_v37  ;;  %v661_v22 = vld [vmem:[#allocation8 + $0x30] sm:$0xff] }
 0xa6a   : > { %v5608_v27 = vpop.permute.xlu1 %5607  ;;  %5771 = vrcp.f32 %v2992_v40  ;;  %v5766_v24 = vpop.eup %5765 }
 0xa6b   : > { %v5610_v33 = vunpack.i.h.bf16 %v5608_v27  ;;  %v5609_v20 = vunpack.i.l.bf16 %v5608_v27  ;;  %v5603_v43 = vpop.permute.xlu0 %5602  ;;  %v3005_v53 = vmul.f32 %v5766_v24, %v6701_v3 }
 0xa6c   : > { %v5605_v13 = vunpack.i.h.bf16 %v5603_v43  ;;  %v5604_v17 = vunpack.i.l.bf16 %v5603_v43 }
 0xa6d   : > { %v5331_v16 = vpack.c.bf16 %v5610_v33, %v5609_v20 }
 0xa6e   : > { %v5327_v19 = vpack.c.bf16 %v5605_v13, %v5604_v17  ;;  %v5613_v35 = vpop.permute.xlu1 %5612 }
 0xa6f   : > { %v5615_v23 = vunpack.i.h.bf16 %v5613_v35  ;;  %v5614_v51 = vunpack.i.l.bf16 %v5613_v35  ;;  %5332 = vmatprep.subr.bf16.mxu1 %v5331_v16  ;;  %v5623_v52 = vpop.permute.xlu0 %5622 }
 0xa70   : > { %5328 = vmatprep.subr.bf16.mxu0 %v5327_v19  ;;  %5334 = vmatpush3.bf16.msra.mxu1 %v5331_v16  ;;  %v5625_v39 = vunpack.i.h.bf16 %v5623_v52  ;;  %v5624_v59 = vunpack.i.l.bf16 %v5623_v52 }
 0xa71   : > { %v5335_v38 = vpack.c.bf16 %v5615_v23, %v5614_v51  ;;  %5330 = vmatpush3.bf16.msra.mxu0 %v5327_v19 }
 0xa72   : > { %v5768_v54 = vpop.eup %5767  ;;  %v5618_v55 = vpop.permute.xlu1 %5617  ;;  %v5343_v3 = vpack.c.bf16 %v5625_v39, %v5624_v59 }
 0xa73   : > { %v5770_v30 = vpop.eup %5769  ;;  %v5620_v60 = vunpack.i.h.bf16 %v5618_v55  ;;  %v5619_v61 = vunpack.i.l.bf16 %v5618_v55  ;;  %5115 = vmatmul.mubr.msk.f32.vlgmr.msra.gmra.mrb[32].mxu1 %vm1060_vm3, %v3004_v50  ;;  %v3496_v57 = vpop.permute.xlu0 %3495  ;;  %5336 = vmatprep.subr.bf16.mxu0 %v5335_v38  ;;  %v3007_v62 = vmul.f32 %v5768_v54, %v6709_v7  ;;  %v670_v50 = vld [vmem:[#allocation8 + $0x78] sm:$0xff]  ;;  %v669_v54 = vld [vmem:[#allocation8 + $0x70] sm:$0xff] }
 0xa74   : > { %5108 = vmatmul.mubr.msk.f32.vlgmr.msra.gmra.mrb[30].mxu0 %vm1060_vm3, %v3002_v56  ;;  %v5772_v45 = vpop.eup %5771  ;;  %v3006_v0 = vmul.f32 %v5770_v30, %v6699_v2 }
 0xa75   : > { %v5339_v29 = vpack.c.bf16 %v5620_v60, %v5619_v61  ;;  %5338 = vmatpush3.bf16.msra.mxu0 %v5335_v38  ;;  %5121 = vmatprep.mubr.msk.f32.mxu0 %vm1060_vm3, %v3005_v53  ;;  %v3008_v7 = vmul.f32 %v5772_v45, %v6707_v6 }
 0xa76   : > { %5128 = vmatprep.mubr.msk.f32.mxu1 %vm1060_vm3, %v3007_v62  ;;  %v5628_v1 = vpop.permute.xlu1 %5627  ;;  %5131 = vmatprep.subr.mxu0 %v3357_v58 }
 0xa77   : > { %5340 = vmatprep.subr.bf16.mxu1 %v5339_v29  ;;  %v5633_v5 = vpop.permute.xlu0 %5632  ;;  %v5630_v12 = vunpack.i.h.bf16 %v5628_v1  ;;  %v5629_v63 = vunpack.i.l.bf16 %v5628_v1 }
 0xa78   : > { %v5635_v48 = vunpack.i.h.bf16 %v5633_v5  ;;  %v5634_v8 = vunpack.i.l.bf16 %v5633_v5  ;;  %5122 = vmatmul.mubr.msk.f32.vlgmr.msra.gmra.mrb[32].mxu0 %vm1060_vm3, %v3006_v0  ;;  %5342 = vmatpush3.bf16.msra.mxu1 %v5339_v29 }
 0xa79   : > { %5345 = vmatprep.subr.msk.bf16.mxu1 %vm6378_vm2, %v5343_v3  ;;  %5132 = vmatpush3.msra.mxu0 %v3357_v58  ;;  %v5349_v32 = vpack.c.bf16 %v5630_v12, %v5629_v63  ;;  %v685_v63 = vld [vmem:[#allocation8 + $0xf0] sm:$0xff] }
 0xa7a   : > { %v5355_v11 = vpack.c.bf16 %v5635_v48, %v5634_v8  ;;  %v3498_v2 = vpop.permute.xlu1 %3497  ;;  %v678_v8 = vld [vmem:[#allocation8 + $0xb8] sm:$0xff] }
 0xa7b   : > { %5129 = vmatmul.mubr.msk.f32.vlgmr.msra.gmra.mrb[34].mxu1 %vm1060_vm3, %v3008_v7  ;;  %v3587_v6 = vpop.permute.xlu0 %3586 }
 0xa7c   : > { %5149 = vmatprep.mubr.msk.f32.mxu1 %vm701_vm1, %v3496_v57  ;;  %5357 = vmatprep.subr.msk.bf16.mxu0 %vm6378_vm2, %v5355_v11 }
 0xa7e   : > { %v5638_v25 = vpop.permute.xlu1 %5637 }
 0xa7f   : > { %v5640_v15 = vunpack.i.h.bf16 %v5638_v25  ;;  %v5639_v34 = vunpack.i.l.bf16 %v5638_v25  ;;  %v3678_v26 = vpop.permute.xlu0 %3677 }
 0xa81   : > { %5348 = vmatpush3.bf16.xpose.msk.msra.mxu1 %vm6378_vm2, %v5343_v3  ;;  %v5361_v37 = vpack.c.bf16 %v5640_v15, %v5639_v34 }
 0xa82   : > { %5351 = vmatprep.subr.msk.bf16.mxu1 %vm6378_vm2, %v5349_v32  ;;  %v3589_v10 = vpop.permute.xlu1 %3588 }
 0xa83   : > { %v3769_v40 = vpop.permute.xlu0 %3768 }
 0xa86   : > { %v3680_v41 = vpop.permute.xlu1 %3679 }
 0xa88   : > { %5150 = vmatmul.mubr.msk.f32.vlgmr.msra.gmra.mrb[36].mxu1 %vm701_vm1, %v3498_v2  ;;  %v686_v2 = vld [vmem:[#allocation8 + $0xf8] sm:$0xff] }
 0xa89   : > { %5354 = vmatpush3.bf16.xpose.msk.msra.mxu1 %vm6378_vm2, %v5349_v32  ;;  %5156 = vmatprep.mubr.msk.f32.mxu1 %vm701_vm1, %v3587_v6 }
 0xa8a   : > { %5363 = vmatprep.subr.msk.bf16.mxu1 %vm6378_vm2, %v5361_v37  ;;  %v3771_v42 = vpop.permute.xlu1 %3770 }
 0xa90   : > { %5157 = vmatmul.mubr.msk.f32.vlgmr.msra.gmra.mrb[38].mxu1 %vm701_vm1, %v3589_v10 }
 0xa91   : > { %5366 = vmatpush3.bf16.xpose.msk.msra.mxu1 %vm6378_vm2, %v5361_v37  ;;  %5170 = vmatprep.mubr.msk.f32.mxu1 %vm701_vm1, %v3769_v40 }
 0xa98   : > { %5171 = vmatmul.mubr.msk.f32.vlgmr.msra.gmra.mrb[40].mxu1 %vm701_vm1, %v3771_v42 }
 0xb46   : > { %v5116_v27 = vpop.f32.mrb[32].mxu1 }
 0xb47   : > { %v5109_v33 = vpop.f32.mrb[30].mxu0  ;;  %v3174_v20 = vpop.f32.mrb[33].mxu1 }
 0xb48   : > { %v3087_v43 = vpop.f32.mrb[31].mxu0 }
 0xb49   : > { %5133 = vmatprep.mubr.msk.f32.mxu0 %vm701_vm1, %v3087_v43 }
 0xb4a   : > { %5134 = vmatmul.mubr.msk.f32.vlgmr.msra.gmra.mrb[22].mxu0 %vm701_vm1, %v5109_v33 }
 0xb4b   : > { %5360 = vmatpush3.bf16.xpose.msk.msra.mxu0 %vm6378_vm2, %v5355_v11  ;;  %v5123_v13 = vpop.f32.mrb[32].mxu0  ;;  %5136 = vmatprep.mubr.msk.f32.mxu0 %vm701_vm1, %v3174_v20  ;;  %v677_v11 = vld [vmem:[#allocation8 + $0xb0] sm:$0xff] }
 0xb4c   : > { %v3261_v17 = vpop.f32.mrb[33].mxu0 }
 0xb4e   : > { %v5130_v44 = vpop.f32.mrb[34].mxu1  ;;  %5137 = vmatmul.mubr.msk.f32.gmra.mrb[24].mxu0 %vm701_vm1, %v5116_v27 }
 0xb4f   : > { %v3348_v16 = vpop.f32.mrb[35].mxu1  ;;  %5139 = vmatprep.mubr.msk.f32.mxu0 %vm701_vm1, %v3261_v17 }
 0xb52   : > { %5140 = vmatmul.mubr.msk.f32.gmra.mrb[26].mxu0 %vm701_vm1, %v5123_v13 }
 0xb53   : > { %5142 = vmatprep.mubr.msk.f32.mxu0 %vm701_vm1, %v3348_v16 }
 0xb56   : > { %5143 = vmatmul.mubr.msk.f32.gmra.mrb[28].mxu0 %vm701_vm1, %v5130_v44 }
 0xb57   : > { %5163 = vmatprep.mubr.msk.f32.mxu0 %vm701_vm1, %v3678_v26 }
 0xb5a   : > { %5164 = vmatmul.mubr.msk.f32.vlgmr.msra.gmra.mrb[34].mxu0 %vm701_vm1, %v3680_v41 }
 0xb5b   : > { %v5151_v19 = vpop.f32.mrb[36].mxu1 }
 0xb5c   : > { %v3583_v35 = vadd.f32 %v5151_v19, %v662_v18  ;;  %v3577_v24 = vpop.f32.mrb[37].mxu1 }
 0xb5d   : > { %v3578_v23 = vadd.f32 %v3577_v24, %v661_v22 }
 0xb5e   : > { %v3862_v51 = vsel %vm1060_vm3, %v3583_v35, -inf }
 0xb5f   : > { %3863 = vmax.xlane.f32.xlu1 %v3862_v51  ;;  %v3859_v52 = vsel %vm1060_vm3, %v3578_v23, -inf }
 0xb60   : > { %3860 = vmax.xlane.f32.xlu0 %v3859_v52 }
 0xb63   : > { %v5158_v38 = vpop.f32.mrb[38].mxu1 }
 0xb64   : > { %v3674_v56 = vadd.f32 %v5158_v38, %v670_v50  ;;  %v3668_v39 = vpop.f32.mrb[39].mxu1 }
 0xb65   : > { %v3669_v55 = vadd.f32 %v3668_v39, %v669_v54 }
 0xb66   : > { %v3868_v53 = vsel %vm1060_vm3, %v3674_v56, -inf }
 0xb67   : > { %3869 = vmax.xlane.f32.xlu0 %v3868_v53  ;;  %v3865_v30 = vsel %vm1060_vm3, %v3669_v55, -inf }
 0xb6b   : > { %v5172_v59 = vpop.f32.mrb[40].mxu1  ;;  %3866 = vmax.xlane.f32.xlu0 %v3865_v30 }
 0xb6c   : > { %v3850_v60 = vpop.f32.mrb[41].mxu1  ;;  %v3856_v15 = vadd.f32 %v5172_v59, %v686_v2 }
 0xb6d   : > { %v3851_v37 = vadd.f32 %v3850_v60, %v685_v63 }
 0xb6e   : > { %v3880_v10 = vsel %vm1060_vm3, %v3856_v15, -inf }
 0xb6f   : > { %v3877_v41 = vsel %vm1060_vm3, %v3851_v37, -inf }
 0xbec   : > { %v3864_v62 = vpop.xlane.xlu1 %3863 }
 0xbed   : > { %v3861_v61 = vpop.xlane.xlu0 %3860  ;;  %v3884_v58 = vsub.f32 %v3583_v35, %v3864_v62 }
 0xbee   : > { %v3883_v29 = vsub.f32 %v3578_v23, %v3861_v61 }
 0xbef   : > { %v3893_v0 = vmul.f32 1.442695, %v3884_v58 }
 0xbf0   : > { %v3891_v3 = vmul.f32 1.442695, %v3883_v29 }
 0xbf1   : > { %5773 = vpow2.f32 %v3893_v0 }
 0xbf2   : > { %5775 = vpow2.f32 %v3891_v3 }
 0xbf4   : > { %v3870_v57 = vpop.xlane.xlu0 %3869 }
 0xbf5   : > { %v3886_v1 = vsub.f32 %v3674_v56, %v3870_v57 }
 0xbf7   : > { %v3897_v48 = vmul.f32 1.442695, %v3886_v1 }
 0xbf8   : > { %v3867_v45 = vpop.xlane.xlu0 %3866 }
 0xbf9   : > { %v3885_v5 = vsub.f32 %v3669_v55, %v3867_v45  ;;  %5777 = vpow2.f32 %v3897_v48 }
 0xbfb   : > { %v3895_v7 = vmul.f32 1.442695, %v3885_v5  ;;  %v6785_v40 = vpop.eup %5773 }
 0xbfc   : > { %v5776_v42 = vpop.eup %5775  ;;  %v3910_v27 = vsel %vm1060_vm3, %v6785_v40, 0.0 }
 0xbfd   : > { %5779 = vpow2.f32 %v3895_v7  ;;  %v3907_v20 = vsel %vm1060_vm3, %v5776_v42, 0.0 }
 0xc03   : > { %v6790_v33 = vpop.eup %5777 }
 0xc04   : > { %v3916_v13 = vsel %vm1060_vm3, %v6790_v33, 0.0 }
 0xc07   : > { %v6793_v43 = vpop.eup %5779 }
 0xc08   : > { %v3913_v17 = vsel %vm1060_vm3, %v6793_v43, 0.0 }
 0xc2d   : > { %v5165_v12 = vpop.f32.mrb[34].mxu0 }
 0xc2e   : > { %v3765_v32 = vadd.f32 %v5165_v12, %v678_v8  ;;  %v3759_v25 = vpop.f32.mrb[35].mxu0 }
 0xc2f   : > { %v3760_v6 = vadd.f32 %v3759_v25, %v677_v11 }
 0xc30   : > { %v3874_v34 = vsel %vm1060_vm3, %v3765_v32, -inf }
 0xc31   : > { %3875 = vmax.xlane.f32.xlu1 %v3874_v34  ;;  %v3871_v26 = vsel %vm1060_vm3, %v3760_v6, -inf }
 0xc32   : > { %3872 = vmax.xlane.f32.xlu0 %v3871_v26 }
 0xc35   : > { %3881 = vmax.xlane.f32.xlu1 %v3880_v10 }
 0xc36   : > { %3878 = vmax.xlane.f32.xlu0 %v3877_v41 }
 0xc39   : > { %3911 = vadd.xlane.f32.xlu1 %v3910_v27 }
 0xc3a   : > { %3908 = vadd.xlane.f32.xlu0 %v3907_v20 }
 0xc3d   : > { %3917 = vadd.xlane.f32.xlu1 %v3916_v13 }
 0xc3e   : > { %3914 = vadd.xlane.f32.xlu0 %v3913_v17 }
 0xcbe   : > { %v3876_v44 = vpop.xlane.xlu1 %3875 }
 0xcbf   : > { %v3888_v16 = vsub.f32 %v3765_v32, %v3876_v44  ;;  %v3873_v18 = vpop.xlane.xlu0 %3872 }
 0xcc0   : > { %v3887_v22 = vsub.f32 %v3760_v6, %v3873_v18 }
 0xcc1   : > { %v3901_v19 = vmul.f32 1.442695, %v3888_v16 }
 0xcc2   : > { %v3882_v35 = vpop.xlane.xlu1 %3881  ;;  %v3899_v52 = vmul.f32 1.442695, %v3887_v22  ;;  %v4295_v22 = vld [vmem:[#allocation7 + $0x18] sm:$0xff] }
 0xcc3   : > { %v3890_v24 = vsub.f32 %v3856_v15, %v3882_v35  ;;  %v3879_v23 = vpop.xlane.xlu0 %3878  ;;  %5781 = vpow2.f32 %v3901_v19 }
 0xcc4   : > { %v3889_v51 = vsub.f32 %v3851_v37, %v3879_v23 }
 0xcc5   : > { %v3905_v50 = vmul.f32 1.442695, %v3890_v24 }
 0xcc6   : > { %v3903_v38 = vmul.f32 1.442695, %v3889_v51  ;;  %v3912_v58 = vpop.xlane.xlu1 %3911 }
 0xcc7   : > { %5783 = vpow2.f32 %v3905_v50  ;;  %v3909_v54 = vpop.xlane.xlu0 %3908 }
 0xcc8   : > { %5785 = vpow2.f32 %v3903_v38  ;;  %v4728_v38 = vld [vmem:[%s6913_s6] ss:$0 sm:$0xff] }
 0xcc9   : > { %5787 = vpow2.f32 %v3899_v52 }
 0xcca   : > { %5789 = vrcp.f32 %v3909_v54  ;;  %v3918_v29 = vpop.xlane.xlu1 %3917 }
 0xccb   : > { %v3915_v45 = vpop.xlane.xlu0 %3914  ;;  %5791 = vrcp.f32 %v3912_v58 }
 0xccc   : > { %5793 = vrcp.f32 %v3915_v45 }
 0xccd   : > { %v6799_v56 = vpop.eup %5781 }
 0xcce   : > { %v3922_v57 = vsel %vm1060_vm3, %v6799_v56, 0.0 }
 0xcd1   : > { %v6801_v39 = vpop.eup %5783 }
 0xcd2   : > { %v6803_v55 = vpop.eup %5785  ;;  %v3928_v53 = vsel %vm1060_vm3, %v6801_v39, 0.0 }
 0xcd3   : > { %v5788_v30 = vpop.eup %5787  ;;  %3929 = vadd.xlane.f32.xlu1 %v3928_v53  ;;  %v3925_v59 = vsel %vm1060_vm3, %v6803_v55, 0.0 }
 0xcd4   : > { %v5790_v60 = vpop.eup %5789  ;;  %3926 = vadd.xlane.f32.xlu0 %v3925_v59  ;;  %v3919_v62 = vsel %vm1060_vm3, %v5788_v30, 0.0 }
 0xcd5   : > { %v3939_v61 = vmul.f32 %v5790_v60, %v5776_v42  ;;  %v5792_v2 = vpop.eup %5791 }
 0xcd6   : > { %v5794_v32 = vpop.eup %5793  ;;  %v3940_v37 = vmul.f32 %v5792_v2, %v6785_v40 }
 0xcd7   : > { %5177 = vmatprep.mubr.msk.f32.mxu0 %vm1060_vm3, %v3939_v61  ;;  %3923 = vadd.xlane.f32.xlu1 %v3922_v57  ;;  %v3941_v27 = vmul.f32 %v5794_v32, %v6793_v43 }
 0xcd8   : > { %3920 = vadd.xlane.f32.xlu0 %v3919_v62 }
 0xce8   : > { %5647 = vrot.lane.b32.xlu1 %v6363_v4, %s6011_s21 }
 0xcec   : > { %5652 = vrot.lane.b32.xlu1 %v6366_v9, %s6011_s21 }
 0xcee   : > { %5642 = vrot.lane.b32.xlu0 %v6356_v49, %s6011_s21 }
 0xcf0   : > { %5657 = vrot.lane.b32.xlu1 %v6373_v14, %s6011_s21 }
 0xd60   : > { %v3930_v0 = vpop.xlane.xlu1 %3929 }
 0xd61   : > { %v3927_v1 = vpop.xlane.xlu0 %3926 }
 0xd64   : > { %v3924_v3 = vpop.xlane.xlu1 %3923 }
 0xd65   : > { %5795 = vrcp.f32 %v3924_v3  ;;  %v3921_v5 = vpop.xlane.xlu0 %3920 }
 0xd66   : > { %5797 = vrcp.f32 %v3921_v5 }
 0xd67   : > { %5799 = vrcp.f32 %v3918_v29 }
 0xd68   : > { %5801 = vrcp.f32 %v3927_v1  ;;  %v5648_v4 = vpop.permute.xlu1 %5647 }
 0xd69   : > { %v5643_v48 = vpop.permute.xlu0 %5642  ;;  %v5650_v9 = vunpack.i.h.bf16 %v5648_v4  ;;  %v5649_v8 = vunpack.i.l.bf16 %v5648_v4  ;;  %5803 = vrcp.f32 %v3930_v0 }
 0xd6a   : > { %v5645_v49 = vunpack.i.h.bf16 %v5643_v48  ;;  %v5644_v7 = vunpack.i.l.bf16 %v5643_v48 }
 0xd6b   : > { %v5371_v25 = vpack.c.bf16 %v5650_v9, %v5649_v8 }
 0xd6c   : > { %v5367_v14 = vpack.c.bf16 %v5645_v49, %v5644_v7  ;;  %v5653_v11 = vpop.permute.xlu1 %5652 }
 0xd6d   : > { %v5655_v12 = vunpack.i.h.bf16 %v5653_v11  ;;  %v5654_v63 = vunpack.i.l.bf16 %v5653_v11 }
 0xd6e   : > { %5368 = vmatprep.subr.bf16.mxu0 %v5367_v14 }
 0xd6f   : > { %v5796_v6 = vpop.eup %5795  ;;  %v5375_v15 = vpack.c.bf16 %v5655_v12, %v5654_v63  ;;  %5370 = vmatpush3.bf16.msra.mxu0 %v5367_v14 }
 0xd70   : > { %v5798_v34 = vpop.eup %5797  ;;  %v5658_v26 = vpop.permute.xlu1 %5657  ;;  %5372 = vmatprep.subr.bf16.mxu0 %v5371_v25  ;;  %v3944_v17 = vmul.f32 %v5796_v6, %v6799_v56 }
 0xd71   : > { %v5800_v10 = vpop.eup %5799  ;;  %v5660_v41 = vunpack.i.h.bf16 %v5658_v26  ;;  %v5659_v42 = vunpack.i.l.bf16 %v5658_v26  ;;  %5376 = vmatprep.subr.bf16.mxu1 %v5375_v15  ;;  %v3943_v20 = vmul.f32 %v5798_v34, %v5788_v30 }
 0xd72   : > { %v5802_v13 = vpop.eup %5801  ;;  %5178 = vmatmul.mubr.msk.f32.vlgmr.msra.gmra.mrb[36].mxu0 %vm1060_vm3, %v3940_v37  ;;  %5378 = vmatpush3.bf16.msra.mxu1 %v5375_v15  ;;  %v3942_v40 = vmul.f32 %v5800_v10, %v6790_v33 }
 0xd73   : > { %v5379_v44 = vpack.c.bf16 %v5660_v41, %v5659_v42  ;;  %5374 = vmatpush3.bf16.msra.mxu0 %v5371_v25  ;;  %5184 = vmatprep.mubr.msk.f32.mxu0 %vm1060_vm3, %v3941_v27  ;;  %v5804_v16 = vpop.eup %5803  ;;  %v3945_v43 = vmul.f32 %v5802_v13, %v6803_v55 }
 0xd74   : > { %5191 = vmatprep.mubr.msk.f32.mxu1 %vm1060_vm3, %v3943_v20  ;;  %v3946_v18 = vmul.f32 %v5804_v16, %v6801_v39 }
 0xd75   : > { %5192 = vmatmul.mubr.msk.f32.vlgmr.msra.gmra.mrb[42].mxu1 %vm1060_vm3, %v3944_v17  ;;  %5380 = vmatprep.subr.bf16.mxu0 %v5379_v44 }
 0xd76   : > { %5185 = vmatmul.mubr.msk.f32.vlgmr.msra.gmra.mrb[38].mxu0 %vm1060_vm3, %v3942_v40 }
 0xd77   : > { %5382 = vmatpush3.bf16.msra.mxu0 %v5379_v44  ;;  %5198 = vmatprep.mubr.msk.f32.mxu0 %vm1060_vm3, %v3945_v43 }
 0xd78   : > { %5201 = vmatprep.subr.mxu0 %v4295_v22 }
 0xd7a   : > { %5199 = vmatmul.mubr.msk.f32.vlgmr.msra.gmra.mrb[40].mxu0 %vm1060_vm3, %v3946_v18 }
 0xd7b   : > { %5202 = vmatpush3.msra.mxu0 %v4295_v22 }
 0xe45   : > { %v5179_v33 = vpop.f32.mrb[36].mxu0 }
 0xe46   : > { %v4025_v19 = vpop.f32.mrb[37].mxu0 }
 0xe47   : > { %5203 = vmatprep.mubr.msk.f32.mxu0 %vm701_vm1, %v4025_v19 }
 0xe48   : > { %v5193_v35 = vpop.f32.mrb[42].mxu1  ;;  %5204 = vmatmul.mubr.msk.f32.vlgmr.msra.gmra.mrb[22].mxu0 %vm701_vm1, %v5179_v33 }
 0xe49   : > { %v5186_v24 = vpop.f32.mrb[38].mxu0  ;;  %v4199_v23 = vpop.f32.mrb[43].mxu1 }
 0xe4a   : > { %v4112_v51 = vpop.f32.mrb[39].mxu0 }
 0xe4b   : > { %5206 = vmatprep.mubr.msk.f32.mxu0 %vm701_vm1, %v4112_v51 }
 0xe4c   : > { %5207 = vmatmul.mubr.msk.f32.gmra.mrb[24].mxu0 %vm701_vm1, %v5186_v24 }
 0xe4d   : > { %v5200_v52 = vpop.f32.mrb[40].mxu0  ;;  %5209 = vmatprep.mubr.msk.f32.mxu0 %vm701_vm1, %v4199_v23 }
 0xe4e   : > { %v4286_v50 = vpop.f32.mrb[41].mxu0 }
 0xe50   : > { %5210 = vmatmul.mubr.msk.f32.gmra.mrb[26].mxu0 %vm701_vm1, %v5193_v35 }
 0xe51   : > { %5212 = vmatprep.mubr.msk.f32.mxu0 %vm701_vm1, %v4286_v50 }
 0xe54   : > { %5213 = vmatmul.mubr.msk.f32.gmra.mrb[28].mxu0 %vm701_vm1, %v5200_v52 }
 0xf1b   : > { %v5205_v54 = vpop.f32.mrb[22].mxu0 }
 0xf1c   : > { %v4441_v56 = vadd.f32 %v5205_v54, %v4728_v38  ;;  %v4386_v39 = vpop.f32.mrb[23].mxu0 }
 0xf1d   : > { %v4440_v55 = vadd.f32 %v4728_v38, %v4386_v39 }
 0xf1e   : > { %4449 = vst.msk [vmem:[%s368_s16 + $0x8] sm:$0xff] %vm379_vm0, %v4441_v56 }
 0xf1f   : > { %4448 = vst.msk [vmem:[%s368_s16] sm:$0xff] %vm379_vm0, %v4440_v55  ;;  %v5208_v53 = vpop.f32.mrb[24].mxu0 }
 0xf20   : > { %v5385_v30 = vadd.f32 %v5208_v53, %v6666_v36  ;;  %v4396_v59 = vpop.f32.mrb[25].mxu0 }
 0xf21   : > { %v5386_v60 = vadd.f32 %v4396_v59, %v6668_v46 }
 0xf22   : > { %v4443_v61 = vadd.f32 %v5385_v30, %v4728_v38 }
 0xf23   : > { %v4442_v57 = vadd.f32 %v5386_v60, %v4728_v38  ;;  %v5211_v62 = vpop.f32.mrb[26].mxu0 }
 0xf24   : > { %4451 = vst.msk [vmem:[%s368_s16 + $0x18] sm:$0xff] %vm379_vm0, %v4443_v61  ;;  %v5387_v58 = vadd.f32 %v5211_v62, %v6670_v21  ;;  %v4406_v29 = vpop.f32.mrb[27].mxu0 }
 0xf25   : > { %4450 = vst.msk [vmem:[%s368_s16 + $0x10] sm:$0xff] %vm379_vm0, %v4442_v57  ;;  %v5388_v45 = vadd.f32 %v4406_v29, %v6672_v47 }
 0xf26   : > { %v4445_v0 = vadd.f32 %v5387_v58, %v4728_v38 }
 0xf27   : > { %v4444_v1 = vadd.f32 %v5388_v45, %v4728_v38  ;;  %v5214_v3 = vpop.f32.mrb[28].mxu0 }
 0xf28   : > { %4453 = vst.msk [vmem:[%s368_s16 + $0x28] sm:$0xff] %vm379_vm0, %v4445_v0  ;;  %v5389_v36 = vadd.f32 %v5214_v3, %v6674_v28  ;;  %v4416_v46 = vpop.f32.mrb[29].mxu0 }
 0xf29   : > { %4452 = vst.msk [vmem:[%s368_s16 + $0x20] sm:$0xff] %vm379_vm0, %v4444_v1  ;;  %v5390_v21 = vadd.f32 %v4416_v46, %v6676_v31 }
 0xf2a   : > { %v4447_v5 = vadd.f32 %v5389_v36, %v4728_v38 }
 0xf2b   : > { %v4446_v47 = vadd.f32 %v5390_v21, %v4728_v38 }
 0xf2c   : > { %4455 = vst.msk [vmem:[%s368_s16 + $0x38] sm:$0xff] %vm379_vm0, %v4447_v5 }
 0xf2d   : > { %4454 = vst.msk [vmem:[%s368_s16 + $0x30] sm:$0xff] %vm379_vm0, %v4446_v47 }
 0xf2e   : > { %5932 = shalt.err (!%p5929_p4)
}
 0xf2f   : > { %s5933_s19 = scalar_lea.hbm %s6859_s14, 1024  ;;  %s5937_s18 = scalar_lea.hbm %s6915_s8, 2048 }
 0xf30   : > { %p5934_p9 = scmp.ne.s32.totalorder %s6859_s14, %s5933_s19  ;;  %p5938_p8 = scmp.lt.u32.totalorder %s6859_s14, %s6915_s8 }
 0xf31   : > { %p5939_p13 = scmp.lt.u32.totalorder %s5937_s18, %s5933_s19  ;;  %p5941_p10 = scmp.lt.u32.totalorder %s5933_s19, %s6859_s14 }
 0xf32   : > { %p5935_p0 = pnand %p5934_p9, %p6214_p5 }
 0xf33   : > { %p5940_p6 = por %p5939_p13, %p5938_p8 }
 0xf34   : > { %p5936_p11 = pneg %p5935_p0 }
 0xf35   : > { %p5942_p3 = por %p5941_p10, %p5940_p6 }
 0xf37   : > { %p5943_p7 = pnand %p5942_p3, %p5936_p11 }
 0xf39   : > { %5946 = shalt.err (!%p5943_p7)
}
 0xf3a   : > { %s6013_s25 = smov 128   ;;  %s6014_s20 = smov 8  }
 0xf3b   : > { %5423 = dma.vmem_to_hbm [thread:$0]  (%p6214_p5), %s6861_s24, 1024, %s6859_s14, %s4457_s9, %s6013_s25, %s6013_s25, %s6014_s20  }
 0xf3c PF: > { %s6939_s15 = sld [smem:[#allocation15_spill]]  ;;  %s6940_s27 = sld [smem:[#allocation16_spill]] }
 0xf3d   : > { %p6942_p1 = scmp.ge.s32.totalorder %s5993_s30, 2 }
 0xf42   : > { %s4486_s11 = sand.u32 1, %s6939_s15   ;;  %p6941_p12 = scmp.ne.s32.totalorder %s6940_s27, 0 }
 0xf43   : > { %s4487_s13 = scalar_lea.sflag [#allocation4], %s4486_s11 }
 0xf44   : > { %p5440_p2 = pnand %p6942_p1, %p6941_p12 }
 0xf46   : > { %5976 = dma.done.wait (!%p5440_p2), %s4487_s13, 1024  }
 0xf47   : > { %5978 = vsyncadd (!%p5440_p2), %s4487_s13, 4294966272  ;;  %p23_p4 = scmp.ge.s32.totalorder %s6200_s26, 4   ;;  %s6943_s27 = smov %s5985_s28 }
 0xf48   : > { %s6944_s28 = smov %s5989_s29  ;;  %s6945_s29 = smov %s6210_s22 }
 0xf49   : > { %s6946_s30 = smov %s6200_s26  ;;  %25 = sbr.rel (!%p23_p4) target bundleno = 7 (0x7), region = 109 }
 0xf50   :  { %4492 = vsyncpa [#allocation3], 1 }
 0xf51   :  { %4494 = vsyncpa [#allocation3 + $0x1], 1 }
 0xf52   :  { %4495 = vsyncpa [#allocation6], 1 }
 0xf53   :  { %4496 = vsyncpa [#allocation9], 1 }
 0xf54   :  { %4497 = vsyncpa [#allocation4], 1 }
 0xf55   :  { %4499 = vsyncpa [#allocation4 + $0x1], 1 }

</bundles_post_ra>
